<compile_context>
chip_gen: v7x
topology: tpu7x:2x2x1
jax: 0.10.0
libtpu: 0.0.40
codegen_flags: <defaults>
</compile_context>

<pallas_src>
import functools

import jax
import jax.numpy as jnp
from jax import lax
from jax.experimental import pallas as pl
from jax.experimental.pallas import tpu as pltpu


# ----------------------------- Fused layer kernel ---------------------------

def _fused_mha_layer_kernel(q_ref, kv_ref, wq_ref, wkv_ref, wo_ref, o_ref, *,
                            num_heads, d_key, d_value):
    """One batch per grid step: proj + attention + output proj, all in VMEM.

    q_ref  : (1, S, D)   bf16  query source (x1)
    kv_ref : (1, S, D)   bf16  key/value source (previous layer output)
    wq_ref : (D, H*dk)   bf16  (1/sqrt(dk) already folded in)
    wkv_ref: (D, H*(dk+dv)) bf16  (wk | wv concatenated)
    wo_ref : (H*dv, D)   bf16
    o_ref  : (1, S, D)   bf16
    """
    q_in = q_ref[0]          # (S, D)
    kv_in = kv_ref[0]        # (S, D)

    # Projections: bf16 MXU operands, f32 accumulation, back to bf16 for attn.
    q = jnp.dot(q_in, wq_ref[...],
                preferred_element_type=jnp.float32).astype(jnp.bfloat16)
    kv = jnp.dot(kv_in, wkv_ref[...],
                 preferred_element_type=jnp.float32).astype(jnp.bfloat16)

    k_cols = num_heads * d_key
    outs = []
    for h in range(num_heads):  # static loop keeps the MXU fed back-to-back
        qh = q[:, h * d_key:(h + 1) * d_key]                               # (S, dk)
        kh = kv[:, h * d_key:(h + 1) * d_key]                              # (S, dk)
        vh = kv[:, k_cols + h * d_value:k_cols + (h + 1) * d_value]        # (S, dv)
        # QK^T without materialising a transpose: contract the last dims.
        s = lax.dot_general(qh, kh, (((1,), (1,)), ((), ())),
                            preferred_element_type=jnp.float32)            # (S, S)
        m = jnp.max(s, axis=-1, keepdims=True)
        p = jnp.exp(s - m)
        denom = jnp.sum(p, axis=-1, keepdims=True)
        oh = lax.dot_general(p.astype(jnp.bfloat16), vh,
                             (((1,), (0,)), ((), ())),
                             preferred_element_type=jnp.float32)           # (S, dv)
        outs.append((oh * pl.reciprocal(denom, approx=True))               # EUP recip
                    .astype(jnp.bfloat16))

    attn = jnp.concatenate(outs, axis=-1)                                  # (S, H*dv)
    # Output projection fused in: one (S, H*dv) @ (H*dv, D) matmul.
    out = jnp.dot(attn, wo_ref[...], preferred_element_type=jnp.float32)   # (S, D)
    o_ref[0] = out.astype(o_ref.dtype)                                     # lane-dense store


def fused_mha_layer(q_src, kv_src, wq, wkv, wo, *, num_heads, d_key, d_value):
    """q_src/kv_src: (B, S, D) bf16 -> (B, S, D) bf16, one pallas_call."""
    B, S, D = q_src.shape
    kernel = functools.partial(_fused_mha_layer_kernel, num_heads=num_heads,
                               d_key=d_key, d_value=d_value)
    # TODO(synk): for larger S, switch the per-head attention to key-block
    # (flash-style) tiling so the (S, S) f32 score never exceeds v7x's VMEM.
    return pl.pallas_call(
        kernel,
        out_shape=jax.ShapeDtypeStruct((B, S, D), jnp.bfloat16),
        grid=(B,),
        in_specs=[
            pl.BlockSpec((1, S, D), lambda b: (b, 0, 0)),
            pl.BlockSpec((1, S, D), lambda b: (b, 0, 0)),
            # Weights: constant index_map -> fetched once, VMEM-resident.
            pl.BlockSpec((D, num_heads * d_key), lambda b: (0, 0)),
            pl.BlockSpec((D, num_heads * (d_key + d_value)), lambda b: (0, 0)),
            pl.BlockSpec((num_heads * d_value, D), lambda b: (0, 0)),
        ],
        out_specs=pl.BlockSpec((1, S, D), lambda b: (b, 0, 0)),
        compiler_params=pltpu.CompilerParams(
            dimension_semantics=("parallel",)),   # 2+ steps -> both v7x TCs busy
    )(q_src, kv_src, wq, wkv, wo)


# ----------------------------- Model wrapper -------------------------------

def init_params(key, d_model, num_heads, d_key, d_value, num_layers):
    """bf16 weights; the 1/sqrt(d_key) attention scale is folded into wq."""
    scale = 1.0 / float(d_key) ** 0.5
    params = []
    for _ in range(num_layers):
        key, k1, k2, k3 = jax.random.split(key, 4)
        s = 1.0 / jnp.sqrt(d_model)
        wq = jax.random.normal(k1, (d_model, num_heads * d_key), jnp.float32) * s
        wkv = jax.random.normal(
            k2, (d_model, num_heads * (d_key + d_value)), jnp.float32) * s
        wo = jax.random.normal(k3, (num_heads * d_value, d_model), jnp.float32) * s
        params.append({
            "wq": (wq * scale).astype(jnp.bfloat16),   # scale folded in
            "wkv": wkv.astype(jnp.bfloat16),           # (wk | wv) fused
            "wo": wo.astype(jnp.bfloat16),
        })
    return params


def model_forward(params, x1, x, x2, *, num_heads, d_key, d_value):
    # mirrors: for attn_layer in layers: x = attn_layer(x1, x, x, attn_mask=None)
    del x2  # unused by the reference forward
    q_src = x1.astype(jnp.bfloat16)     # cast once; bf16 activations end-to-end
    h = x.astype(jnp.bfloat16)
    for lp in params:
        h = fused_mha_layer(q_src, h, lp["wq"], lp["wkv"], lp["wo"],
                            num_heads=num_heads, d_key=d_key, d_value=d_value)
    return h.astype(jnp.float32)


# ----------------------------- Pure-JAX reference ---------------------------

def reference_forward(params, x1, x, num_heads, d_key, d_value):
    """f32 reference using the same (bf16, scale-folded) parameters."""
    def mha(p, q_in, kv_in):
        B, S, D = q_in.shape
        wq = p["wq"].astype(jnp.float32)     # scale already folded in
        wkv = p["wkv"].astype(jnp.float32)
        wo = p["wo"].astype(jnp.float32)
        q = q_in @ wq
        kv = kv_in @ wkv
        k = kv[..., :num_heads * d_key]
        v = kv[..., num_heads * d_key:]

        def split(t, dh):
            return t.reshape(B, S, num_heads, dh).transpose(0, 2, 1, 3)

        qh, kh, vh = split(q, d_key), split(k, d_key), split(v, d_value)
        s = jnp.einsum("bhqd,bhkd->bhqk", qh, kh)
        a = jax.nn.softmax(s, axis=-1)
        oh = jnp.einsum("bhqk,bhkd->bhqd", a, vh)
        o = oh.transpose(0, 2, 1, 3).reshape(B, S, num_heads * d_value)
        return o @ wo

    xf = x.astype(jnp.float32)
    x1f = x1.astype(jnp.float32)
    for lp in params:
        xf = mha(lp, x1f, xf)
    return xf


# --------------------------------- main -------------------------------------

if __name__ == "__main__":
    # Small shapes consistent with the module's (B, S, d_model) convention,
    # chosen so H*dk = H*dv = 128 (lane-dense attention blocks).
    B, S, d_model = 2, 128, 128
    num_heads, d_key, d_value = 4, 32, 32
    d_inner_hid, num_layers, dropout = 256, 2, 0.0  # d_inner_hid unused by forward

    key = jax.random.PRNGKey(0)
    kp, kx1, kx, kx2 = jax.random.split(key, 4)

    params = init_params(kp, d_model, num_heads, d_key, d_value, num_layers)
    x1 = jax.random.normal(kx1, (B, S, d_model), jnp.float32)
    x = jax.random.normal(kx, (B, S, d_model), jnp.float32)
    x2 = jax.random.normal(kx2, (B, S, d_model), jnp.float32)

    fwd = jax.jit(functools.partial(
        model_forward, num_heads=num_heads, d_key=d_key, d_value=d_value))
    out = fwd(params, x1, x, x2)
    jax.block_until_ready(out)

    assert out.shape == (B, S, d_model)
    assert out.dtype == jnp.float32
    assert bool(jnp.isfinite(out).all())

    # Loose tolerance: bf16 weights/activations + approx reciprocal vs f32 ref.
    ref = reference_forward(params, x1, x, num_heads, d_key, d_value)
    err = float(jnp.max(jnp.abs(out - ref)))
    bound = 0.15 * float(jnp.max(jnp.abs(ref))) + 0.05
    assert err <= bound, (err, bound)

    print("KERNEL_OK")
</pallas_src>

<mosaic_0001>
module attributes {stable_mosaic.version = 11 : i64} {
  func.func @_fused_mha_layer_kernel(%arg0: i32, %arg1: memref<1x128x128xbf16, #tpu.memory_space<vmem>>, %arg2: memref<1x128x128xbf16, #tpu.memory_space<vmem>>, %arg3: memref<128x128xbf16, #tpu.memory_space<vmem>>, %arg4: memref<128x256xbf16, #tpu.memory_space<vmem>>, %arg5: memref<128x128xbf16, #tpu.memory_space<vmem>>, %arg6: memref<1x128x128xbf16, #tpu.memory_space<vmem>>) attributes {dimension_semantics = [#tpu.dimension_semantics<parallel>], iteration_bounds = array<i64: 2>, scalar_prefetch = 0 : i64, scratch_operands = 0 : i64, tpu.core_type = #tpu.core_type<tc>, window_params = [{transform_indices = @transform_0, window_bounds = array<i64: 1, 128, 128>}, {transform_indices = @transform_1, window_bounds = array<i64: 1, 128, 128>}, {pipeline_mode = #tpu.pipeline_mode<synchronous>, transform_indices = @transform_2, window_bounds = array<i64: 128, 128>}, {pipeline_mode = #tpu.pipeline_mode<synchronous>, transform_indices = @transform_3, window_bounds = array<i64: 128, 256>}, {pipeline_mode = #tpu.pipeline_mode<synchronous>, transform_indices = @transform_4, window_bounds = array<i64: 128, 128>}, {transform_indices = @transform_5, window_bounds = array<i64: 1, 128, 128>}]} {
    %c0 = arith.constant 0 : index
    %c0_0 = arith.constant 0 : index
    %c0_1 = arith.constant 0 : index
    %0 = vector.load %arg1[%c0, %c0_0, %c0_1] : memref<1x128x128xbf16, #tpu.memory_space<vmem>>, vector<1x128x128xbf16>
    %1 = vector.shape_cast %0 : vector<1x128x128xbf16> to vector<128x128xbf16>
    %c0_2 = arith.constant 0 : index
    %c0_3 = arith.constant 0 : index
    %c0_4 = arith.constant 0 : index
    %2 = vector.load %arg2[%c0_2, %c0_3, %c0_4] : memref<1x128x128xbf16, #tpu.memory_space<vmem>>, vector<1x128x128xbf16>
    %3 = vector.shape_cast %2 : vector<1x128x128xbf16> to vector<128x128xbf16>
    %c0_5 = arith.constant 0 : index
    %c0_6 = arith.constant 0 : index
    %4 = vector.load %arg3[%c0_5, %c0_6] : memref<128x128xbf16, #tpu.memory_space<vmem>>, vector<128x128xbf16>
    %cst = arith.constant dense<0.000000e+00> : vector<128x128xf32>
    %5 = tpu.matmul %1, %4, %cst {dimension_numbers = #tpu.dot_dimension_numbers<[1], [0], [0], [1], [0, 0, 1, 1], [], []>} : vector<128x128xbf16>, vector<128x128xbf16>, vector<128x128xf32> -> vector<128x128xf32>
    %6 = arith.truncf %5 : vector<128x128xf32> to vector<128x128xbf16>
    %c0_7 = arith.constant 0 : index
    %c0_8 = arith.constant 0 : index
    %7 = vector.load %arg4[%c0_7, %c0_8] : memref<128x256xbf16, #tpu.memory_space<vmem>>, vector<128x256xbf16>
    %cst_9 = arith.constant dense<0.000000e+00> : vector<128x256xf32>
    %8 = tpu.matmul %3, %7, %cst_9 {dimension_numbers = #tpu.dot_dimension_numbers<[1], [0], [0], [1], [0, 0, 1, 1], [], []>} : vector<128x128xbf16>, vector<128x256xbf16>, vector<128x256xf32> -> vector<128x256xf32>
    %9 = arith.truncf %8 : vector<128x256xf32> to vector<128x256xbf16>
    %10 = vector.extract_strided_slice %6 {offsets = [0, 0], sizes = [128, 32], strides = [1, 1]} : vector<128x128xbf16> to vector<128x32xbf16>
    %11 = vector.extract_strided_slice %9 {offsets = [0, 0], sizes = [128, 32], strides = [1, 1]} : vector<128x256xbf16> to vector<128x32xbf16>
    %12 = vector.extract_strided_slice %9 {offsets = [0, 128], sizes = [128, 32], strides = [1, 1]} : vector<128x256xbf16> to vector<128x32xbf16>
    %cst_10 = arith.constant dense<0.000000e+00> : vector<128x128xf32>
    %13 = tpu.matmul %10, %11, %cst_10 {dimension_numbers = #tpu.dot_dimension_numbers<[1], [1], [0], [0], [0, 0, 1, 0], [], []>} : vector<128x32xbf16>, vector<128x32xbf16>, vector<128x128xf32> -> vector<128x128xf32>
    %cst_11 = arith.constant dense<0xFF800000> : vector<128xf32>
    %14 = vector.multi_reduction <maximumf>, %13, %cst_11 [1] : vector<128x128xf32> to vector<128xf32>
    %15 = vector.shape_cast %14 : vector<128xf32> to vector<128x1xf32>
    %16 = vector.broadcast %15 : vector<128x1xf32> to vector<128x128xf32>
    %17 = arith.subf %13, %16 : vector<128x128xf32>
    %18 = math.exp %17 : vector<128x128xf32>
    %cst_12 = arith.constant dense<0.000000e+00> : vector<128xf32>
    %19 = vector.multi_reduction <add>, %18, %cst_12 [1] : vector<128x128xf32> to vector<128xf32>
    %20 = vector.shape_cast %19 : vector<128xf32> to vector<128x1xf32>
    %21 = arith.truncf %18 : vector<128x128xf32> to vector<128x128xbf16>
    %cst_13 = arith.constant dense<0.000000e+00> : vector<128x32xf32>
    %22 = tpu.matmul %21, %12, %cst_13 {dimension_numbers = #tpu.dot_dimension_numbers<[1], [0], [0], [1], [0, 0, 1, 1], [], []>} : vector<128x128xbf16>, vector<128x32xbf16>, vector<128x32xf32> -> vector<128x32xf32>
    %23 = tpu.reciprocal %20 {approx = true} : vector<128x1xf32> -> vector<128x1xf32>
    %24 = vector.broadcast %23 : vector<128x1xf32> to vector<128x32xf32>
    %25 = arith.mulf %22, %24 : vector<128x32xf32>
    %26 = arith.truncf %25 : vector<128x32xf32> to vector<128x32xbf16>
    %27 = vector.extract_strided_slice %6 {offsets = [0, 32], sizes = [128, 32], strides = [1, 1]} : vector<128x128xbf16> to vector<128x32xbf16>
    %28 = vector.extract_strided_slice %9 {offsets = [0, 32], sizes = [128, 32], strides = [1, 1]} : vector<128x256xbf16> to vector<128x32xbf16>
    %29 = vector.extract_strided_slice %9 {offsets = [0, 160], sizes = [128, 32], strides = [1, 1]} : vector<128x256xbf16> to vector<128x32xbf16>
    %cst_14 = arith.constant dense<0.000000e+00> : vector<128x128xf32>
    %30 = tpu.matmul %27, %28, %cst_14 {dimension_numbers = #tpu.dot_dimension_numbers<[1], [1], [0], [0], [0, 0, 1, 0], [], []>} : vector<128x32xbf16>, vector<128x32xbf16>, vector<128x128xf32> -> vector<128x128xf32>
    %cst_15 = arith.constant dense<0xFF800000> : vector<128xf32>
    %31 = vector.multi_reduction <maximumf>, %30, %cst_15 [1] : vector<128x128xf32> to vector<128xf32>
    %32 = vector.shape_cast %31 : vector<128xf32> to vector<128x1xf32>
    %33 = vector.broadcast %32 : vector<128x1xf32> to vector<128x128xf32>
    %34 = arith.subf %30, %33 : vector<128x128xf32>
    %35 = math.exp %34 : vector<128x128xf32>
    %cst_16 = arith.constant dense<0.000000e+00> : vector<128xf32>
    %36 = vector.multi_reduction <add>, %35, %cst_16 [1] : vector<128x128xf32> to vector<128xf32>
    %37 = vector.shape_cast %36 : vector<128xf32> to vector<128x1xf32>
    %38 = arith.truncf %35 : vector<128x128xf32> to vector<128x128xbf16>
    %cst_17 = arith.constant dense<0.000000e+00> : vector<128x32xf32>
    %39 = tpu.matmul %38, %29, %cst_17 {dimension_numbers = #tpu.dot_dimension_numbers<[1], [0], [0], [1], [0, 0, 1, 1], [], []>} : vector<128x128xbf16>, vector<128x32xbf16>, vector<128x32xf32> -> vector<128x32xf32>
    %40 = tpu.reciprocal %37 {approx = true} : vector<128x1xf32> -> vector<128x1xf32>
    %41 = vector.broadcast %40 : vector<128x1xf32> to vector<128x32xf32>
    %42 = arith.mulf %39, %41 : vector<128x32xf32>
    %43 = arith.truncf %42 : vector<128x32xf32> to vector<128x32xbf16>
    %44 = vector.extract_strided_slice %6 {offsets = [0, 64], sizes = [128, 32], strides = [1, 1]} : vector<128x128xbf16> to vector<128x32xbf16>
    %45 = vector.extract_strided_slice %9 {offsets = [0, 64], sizes = [128, 32], strides = [1, 1]} : vector<128x256xbf16> to vector<128x32xbf16>
    %46 = vector.extract_strided_slice %9 {offsets = [0, 192], sizes = [128, 32], strides = [1, 1]} : vector<128x256xbf16> to vector<128x32xbf16>
    %cst_18 = arith.constant dense<0.000000e+00> : vector<128x128xf32>
    %47 = tpu.matmul %44, %45, %cst_18 {dimension_numbers = #tpu.dot_dimension_numbers<[1], [1], [0], [0], [0, 0, 1, 0], [], []>} : vector<128x32xbf16>, vector<128x32xbf16>, vector<128x128xf32> -> vector<128x128xf32>
    %cst_19 = arith.constant dense<0xFF800000> : vector<128xf32>
    %48 = vector.multi_reduction <maximumf>, %47, %cst_19 [1] : vector<128x128xf32> to vector<128xf32>
    %49 = vector.shape_cast %48 : vector<128xf32> to vector<128x1xf32>
    %50 = vector.broadcast %49 : vector<128x1xf32> to vector<128x128xf32>
    %51 = arith.subf %47, %50 : vector<128x128xf32>
    %52 = math.exp %51 : vector<128x128xf32>
    %cst_20 = arith.constant dense<0.000000e+00> : vector<128xf32>
    %53 = vector.multi_reduction <add>, %52, %cst_20 [1] : vector<128x128xf32> to vector<128xf32>
    %54 = vector.shape_cast %53 : vector<128xf32> to vector<128x1xf32>
    %55 = arith.truncf %52 : vector<128x128xf32> to vector<128x128xbf16>
    %cst_21 = arith.constant dense<0.000000e+00> : vector<128x32xf32>
    %56 = tpu.matmul %55, %46, %cst_21 {dimension_numbers = #tpu.dot_dimension_numbers<[1], [0], [0], [1], [0, 0, 1, 1], [], []>} : vector<128x128xbf16>, vector<128x32xbf16>, vector<128x32xf32> -> vector<128x32xf32>
    %57 = tpu.reciprocal %54 {approx = true} : vector<128x1xf32> -> vector<128x1xf32>
    %58 = vector.broadcast %57 : vector<128x1xf32> to vector<128x32xf32>
    %59 = arith.mulf %56, %58 : vector<128x32xf32>
    %60 = arith.truncf %59 : vector<128x32xf32> to vector<128x32xbf16>
    %61 = vector.extract_strided_slice %6 {offsets = [0, 96], sizes = [128, 32], strides = [1, 1]} : vector<128x128xbf16> to vector<128x32xbf16>
    %62 = vector.extract_strided_slice %9 {offsets = [0, 96], sizes = [128, 32], strides = [1, 1]} : vector<128x256xbf16> to vector<128x32xbf16>
    %63 = vector.extract_strided_slice %9 {offsets = [0, 224], sizes = [128, 32], strides = [1, 1]} : vector<128x256xbf16> to vector<128x32xbf16>
    %cst_22 = arith.constant dense<0.000000e+00> : vector<128x128xf32>
    %64 = tpu.matmul %61, %62, %cst_22 {dimension_numbers = #tpu.dot_dimension_numbers<[1], [1], [0], [0], [0, 0, 1, 0], [], []>} : vector<128x32xbf16>, vector<128x32xbf16>, vector<128x128xf32> -> vector<128x128xf32>
    %cst_23 = arith.constant dense<0xFF800000> : vector<128xf32>
    %65 = vector.multi_reduction <maximumf>, %64, %cst_23 [1] : vector<128x128xf32> to vector<128xf32>
    %66 = vector.shape_cast %65 : vector<128xf32> to vector<128x1xf32>
    %67 = vector.broadcast %66 : vector<128x1xf32> to vector<128x128xf32>
    %68 = arith.subf %64, %67 : vector<128x128xf32>
    %69 = math.exp %68 : vector<128x128xf32>
    %cst_24 = arith.constant dense<0.000000e+00> : vector<128xf32>
    %70 = vector.multi_reduction <add>, %69, %cst_24 [1] : vector<128x128xf32> to vector<128xf32>
    %71 = vector.shape_cast %70 : vector<128xf32> to vector<128x1xf32>
    %72 = arith.truncf %69 : vector<128x128xf32> to vector<128x128xbf16>
    %cst_25 = arith.constant dense<0.000000e+00> : vector<128x32xf32>
    %73 = tpu.matmul %72, %63, %cst_25 {dimension_numbers = #tpu.dot_dimension_numbers<[1], [0], [0], [1], [0, 0, 1, 1], [], []>} : vector<128x128xbf16>, vector<128x32xbf16>, vector<128x32xf32> -> vector<128x32xf32>
    %74 = tpu.reciprocal %71 {approx = true} : vector<128x1xf32> -> vector<128x1xf32>
    %75 = vector.broadcast %74 : vector<128x1xf32> to vector<128x32xf32>
    %76 = arith.mulf %73, %75 : vector<128x32xf32>
    %77 = arith.truncf %76 : vector<128x32xf32> to vector<128x32xbf16>
    %78 = tpu.concatenate %26, %43, %60, %77 in 1 : vector<128x32xbf16>, vector<128x32xbf16>, vector<128x32xbf16>, vector<128x32xbf16> -> vector<128x128xbf16>
    %c0_26 = arith.constant 0 : index
    %c0_27 = arith.constant 0 : index
    %79 = vector.load %arg5[%c0_26, %c0_27] : memref<128x128xbf16, #tpu.memory_space<vmem>>, vector<128x128xbf16>
    %cst_28 = arith.constant dense<0.000000e+00> : vector<128x128xf32>
    %80 = tpu.matmul %78, %79, %cst_28 {dimension_numbers = #tpu.dot_dimension_numbers<[1], [0], [0], [1], [0, 0, 1, 1], [], []>} : vector<128x128xbf16>, vector<128x128xbf16>, vector<128x128xf32> -> vector<128x128xf32>
    %81 = arith.truncf %80 : vector<128x128xf32> to vector<128x128xbf16>
    %c0_29 = arith.constant 0 : index
    %c0_30 = arith.constant 0 : index
    %c0_31 = arith.constant 0 : index
    %82 = vector.load %arg6[%c0_29, %c0_30, %c0_31] : memref<1x128x128xbf16, #tpu.memory_space<vmem>>, vector<1x128x128xbf16>
    %83 = vector.shape_cast %82 : vector<1x128x128xbf16> to vector<128x128xbf16>
    %84 = vector.shape_cast %81 : vector<128x128xbf16> to vector<1x128x128xbf16>
    tpu.vector_store %arg6[%c0_29, %c0_30, %c0_31], %84 {strides = array<i32>} : memref<1x128x128xbf16, #tpu.memory_space<vmem>>, vector<1x128x128xbf16>,
    return
  }
  func.func @transform_0(%arg0: i32) -> (i32, i32, i32) {
    %c0_i32 = arith.constant 0 : i32
    %c0_i32_0 = arith.constant 0 : i32
    %c0_i32_1 = arith.constant 0 : i32
    return %arg0, %c0_i32, %c0_i32_0 : i32, i32, i32
  }
  func.func @transform_1(%arg0: i32) -> (i32, i32, i32) {
    %c0_i32 = arith.constant 0 : i32
    %c0_i32_0 = arith.constant 0 : i32
    %c0_i32_1 = arith.constant 0 : i32
    return %arg0, %c0_i32, %c0_i32_0 : i32, i32, i32
  }
  func.func @transform_2(%arg0: i32) -> (i32, i32) {
    %c0_i32 = arith.constant 0 : i32
    %c0_i32_0 = arith.constant 0 : i32
    %c0_i32_1 = arith.constant 0 : i32
    return %c0_i32, %c0_i32_0 : i32, i32
  }
  func.func @transform_3(%arg0: i32) -> (i32, i32) {
    %c0_i32 = arith.constant 0 : i32
    %c0_i32_0 = arith.constant 0 : i32
    %c0_i32_1 = arith.constant 0 : i32
    return %c0_i32, %c0_i32_0 : i32, i32
  }
  func.func @transform_4(%arg0: i32) -> (i32, i32) {
    %c0_i32 = arith.constant 0 : i32
    %c0_i32_0 = arith.constant 0 : i32
    %c0_i32_1 = arith.constant 0 : i32
    return %c0_i32, %c0_i32_0 : i32, i32
  }
  func.func @transform_5(%arg0: i32) -> (i32, i32, i32) {
    %c0_i32 = arith.constant 0 : i32
    %c0_i32_0 = arith.constant 0 : i32
    %c0_i32_1 = arith.constant 0 : i32
    return %arg0, %c0_i32, %c0_i32_0 : i32, i32, i32
  }
}

</mosaic_0001>

<bundles_post_ra>
// kernel: model_forward.2
= control target key start
LH: loop header
LB: loop body
LE: loop exit
PB: predicated region body
PF: predicated region fallthrough
CT: control target
= control target key end

     0   :  { %s4068_s18 = smov 0   ;;  %s5400_s0 = inlined_call_operand.vmem [shape: bf16[2,128,128], index: 0, kind: input, shape index: {}]   ;;  %s5401_s1 = inlined_call_operand.vmem [shape: bf16[2,128,128], index: 1, kind: input, shape index: {}]   ;;  %s5402_s2 = inlined_call_operand.vmem [shape: bf16[128,128], index: 2, kind: input, shape index: {}]   ;;  %s5403_s3 = inlined_call_operand.vmem [shape: bf16[128,256], index: 3, kind: input, shape index: {}]   ;;  %s5404_s4 = inlined_call_operand.vmem [shape: bf16[128,128], index: 4, kind: input, shape index: {}]   ;;  %s5405_s5 = inlined_call_operand.vmem [shape: bf16[2,128,128], index: 5, kind: output, shape index: {}]  }
   0x1 LB: > { %s3015_s19 = sadd.s32 4294967295, %s4032_s18   ;;  %p3019_p0 = scmp.ge.s32.totalorder %s4032_s18, 1  ;;  %s4032_s18 = sphi %s4068_s18, %s15_s18  }
   0x2   : > { %p197_p1 = scmp.lt.s32.totalorder %s4032_s18, 3 }
   0x4   : > { %p198_p2 = pnand %p3019_p0, %p197_p1 }
   0x6   : > { %201 = sbr.rel (%p198_p2) target bundleno = 2356 (0x934), region = 40 }
   0xd   : > { %v3714_v0 = vld [vmem:[%s5403_s3 + $0x4] ss:$8 sps:$4 sm:$0xff]   ;;  %p230_p3 = scmp.lt.s32.totalorder %s3015_s19, 1  ;;  %v3716_v1 = vld [vmem:[%s5403_s3] ss:$8 sps:$4 sm:$0xff]   ;;  %v4034_v2 = vmov 0  }
   0xe   : > { %671 = vmatprep.mubr.bf16.mxu1 %v4034_v2  ;;  %639 = vmatprep.subr.bf16.mxu1 %v3714_v0  ;;  %v3717_v3 = vld [vmem:[%s5403_s3 + $0x14] ss:$8 sps:$4 sm:$0xff]   ;;  %v3719_v4 = vld [vmem:[%s5403_s3 + $0x10] ss:$8 sps:$4 sm:$0xff]   ;;  %v3720_v5 = vld [vmem:[%s5403_s3 + $0x24] ss:$8 sps:$4 sm:$0xff]  }
   0xf   : > { %s5567_s19 = smov (!%p230_p3, %s3015_s19), 1  ;;  %640 = vmatpush1.bf16.msra.mxu1 %v3716_v1  ;;  %v3722_v6 = vld [vmem:[%s5403_s3 + $0x20] ss:$8 sps:$4 sm:$0xff]   ;;  %v3723_v7 = vld [vmem:[%s5403_s3 + $0x34] ss:$8 sps:$4 sm:$0xff]   ;;  %vm768_vm0 = vcmask 261120  }
  0x10   : > { %641 = vmatprep.subr.bf16.mxu1 %v3717_v3  ;;  %s4092_s30 = sshll.u32 %s5567_s19, 6  ;;  %v3725_v8 = vld [vmem:[%s5403_s3 + $0x30] ss:$8 sps:$4 sm:$0xff]   ;;  %v3726_v9 = vld [vmem:[%s5403_s3 + $0x44] ss:$8 sps:$4 sm:$0xff]   ;;  %s4035_s29 = smov 96  }
  0x11   : > { %s4104_s12 = scalar_lea.vmem %s5401_s1, %s4092_s30  ;;  %v3739_v10 = vld [vmem:[%s5402_s2] sm:$0xff]   ;;  %v3741_v12 = vld [vmem:[%s5402_s2 + $0x8] sm:$0xff]   ;;  %v3729_v13 = vld [vmem:[%s5403_s3 + $0x54] ss:$8 sps:$4 sm:$0xff]   ;;  %s4143_s15 = scalar_lea.vmem %s5400_s0, %s4092_s30  ;;  %vm2665_vm1 = vcmask 523264   ;;  %vm2682_vm2 = vcmask 785408  }
  0x12   : > { %v3728_v11 = vld [vmem:[%s5403_s3 + $0x40] ss:$8 sps:$4 sm:$0xff]   ;;  %3350 = vmatprep.subr.bf16.mxu0 %v3739_v10  ;;  %v3742_v14 = vld [vmem:[%s5402_s2 + $0x10] sm:$0xff]   ;;  %v3732_v16 = vld [vmem:[%s5403_s3 + $0x64] ss:$8 sps:$4 sm:$0xff]   ;;  %s4037_s6 = smov 32   ;;  %s244_s27 = scalar_lea.vmem %s5405_s5, %s4092_s30 }
  0x13   : > { %642 = vmatpush1.bf16.msra.mxu1 %v3719_v4  ;;  %3351 = vmatpush3.bf16.msra.mxu0 %v3739_v10  ;;  %v3731_v15 = vld [vmem:[%s5403_s3 + $0x50] ss:$8 sps:$4 sm:$0xff]   ;;  %v3734_v18 = vld [vmem:[%s5403_s3 + $0x60] ss:$8 sps:$4 sm:$0xff]   ;;  %v3735_v19 = vld [vmem:[%s5403_s3 + $0x74] ss:$8 sps:$4 sm:$0xff]  }
  0x14   : > { %643 = vmatprep.subr.bf16.mxu1 %v3720_v5  ;;  %3352 = vmatprep.subr.bf16.mxu0 %v3741_v12  ;;  %v3744_v17 = vld [vmem:[%s5402_s2 + $0x18] sm:$0xff]   ;;  %v3745_v20 = vld [vmem:[%s5402_s2 + $0x20] sm:$0xff]   ;;  %v3747_v23 = vld [vmem:[%s5402_s2 + $0x28] sm:$0xff]  }
  0x15   : > { %v3751_v21 = vld [vmem:[%s4143_s15] sm:$0xff]   ;;  %v3737_v22 = vld [vmem:[%s5403_s3 + $0x70] ss:$8 sps:$4 sm:$0xff]   ;;  %v3740_v27 = vld [vmem:[%s4104_s12 + $0x8] sm:$0xff]  }
  0x16   : > { %3366 = vmatprep.mubr.bf16.mxu0 %v3751_v21  ;;  %v3738_v24 = vld [vmem:[%s4104_s12] sm:$0xff]   ;;  %v3748_v25 = vld [vmem:[%s5402_s2 + $0x30] sm:$0xff]   ;;  %v3750_v26 = vld [vmem:[%s5402_s2 + $0x38] sm:$0xff]  }
  0x17   : > { %644 = vmatpush1.bf16.msra.mxu1 %v3722_v6  ;;  %3353 = vmatpush3.bf16.msra.mxu0 %v3741_v12  ;;  %v3752_v28 = vld [vmem:[%s4143_s15 + $0x8] sm:$0xff]   ;;  %v3754_v29 = vld [vmem:[%s4143_s15 + $0x10] sm:$0xff]   ;;  %v3755_v31 = vld [vmem:[%s4143_s15 + $0x18] sm:$0xff]  }
  0x18   : > { %645 = vmatprep.subr.bf16.mxu1 %v3723_v7  ;;  %3354 = vmatprep.subr.bf16.mxu0 %v3742_v14  ;;  %v3743_v30 = vld [vmem:[%s4104_s12 + $0x10] sm:$0xff]   ;;  %v3757_v32 = vld [vmem:[%s4143_s15 + $0x20] sm:$0xff]   ;;  %v3746_v33 = vld [vmem:[%s4104_s12 + $0x18] sm:$0xff]  }
  0x19   : > { %v3758_v34 = vld [vmem:[%s4143_s15 + $0x28] sm:$0xff]   ;;  %v3760_v35 = vld [vmem:[%s4143_s15 + $0x30] sm:$0xff]   ;;  %v3749_v36 = vld [vmem:[%s4104_s12 + $0x20] sm:$0xff]  }
  0x1a   : > { %v3761_v37 = vld [vmem:[%s4143_s15 + $0x38] sm:$0xff]   ;;  %v3753_v38 = vld [vmem:[%s4104_s12 + $0x28] sm:$0xff]   ;;  %v3756_v39 = vld [vmem:[%s4104_s12 + $0x30] sm:$0xff]  }
  0x1b   : > { %646 = vmatpush1.bf16.msra.mxu1 %v3725_v8  ;;  %3355 = vmatpush3.bf16.msra.mxu0 %v3742_v14  ;;  %v3759_v40 = vld [vmem:[%s4104_s12 + $0x38] sm:$0xff]   ;;  %s4036_s12 = smov 64  }
  0x1c   : > { %647 = vmatprep.subr.bf16.mxu1 %v3726_v9  ;;  %3356 = vmatprep.subr.bf16.mxu0 %v3744_v17 }
  0x1f   : > { %648 = vmatpush1.bf16.msra.mxu1 %v3728_v11  ;;  %3357 = vmatpush3.bf16.msra.mxu0 %v3744_v17 }
  0x20   : > { %649 = vmatprep.subr.bf16.mxu1 %v3729_v13  ;;  %3358 = vmatprep.subr.bf16.mxu0 %v3745_v20 }
  0x23   : > { %650 = vmatpush1.bf16.msra.mxu1 %v3731_v15  ;;  %3359 = vmatpush3.bf16.msra.mxu0 %v3745_v20 }
  0x24   : > { %651 = vmatprep.subr.bf16.mxu1 %v3732_v16  ;;  %3360 = vmatprep.subr.bf16.mxu0 %v3747_v23 }
  0x27   : > { %652 = vmatpush1.bf16.msra.mxu1 %v3734_v18  ;;  %3361 = vmatpush3.bf16.msra.mxu0 %v3747_v23 }
  0x28   : > { %653 = vmatprep.subr.bf16.mxu1 %v3735_v19  ;;  %3362 = vmatprep.subr.bf16.mxu0 %v3748_v25 }
  0x2b   : > { %654 = vmatpush1.bf16.msra.mxu1 %v3737_v22  ;;  %3363 = vmatpush3.bf16.msra.mxu0 %v3748_v25 }
  0x2c   : > { %3364 = vmatprep.subr.bf16.mxu0 %v3750_v26 }
  0x2e   : > { %672 = vmatmul.mubr.bf16.vlgmr.msra.gmra.mrb[0].mxu1 %v3738_v24 }
  0x2f   : > { %681 = vmatprep.mubr.bf16.mxu1 %v4034_v2  ;;  %3365 = vmatpush3.bf16.msra.mxu0 %v3750_v26 }
  0x32   : > { %3367 = vmatmul.mubr.bf16.vlgmr.msra.gmra.mrb[0].mxu0 %v3752_v28 }
  0x33   : > { %3370 = vmatprep.mubr.bf16.mxu0 %v3754_v29 }
  0x36   : > { %682 = vmatmul.mubr.bf16.gmra.mrb[4].mxu1 %v3740_v27 }
  0x37   : > { %691 = vmatprep.mubr.bf16.mxu1 %v4034_v2 }
  0x3a   : > { %3371 = vmatmul.mubr.bf16.gmra.mrb[4].mxu0 %v3755_v31 }
  0x3b   : > { %3374 = vmatprep.mubr.bf16.mxu0 %v3757_v32 }
  0x3e   : > { %692 = vmatmul.mubr.bf16.gmra.mrb[8].mxu1 %v3743_v30 }
  0x3f   : > { %701 = vmatprep.mubr.bf16.mxu1 %v4034_v2 }
  0x42   : > { %3375 = vmatmul.mubr.bf16.gmra.mrb[8].mxu0 %v3758_v34 }
  0x43   : > { %3378 = vmatprep.mubr.bf16.mxu0 %v3760_v35 }
  0x46   : > { %702 = vmatmul.mubr.bf16.gmra.mrb[12].mxu1 %v3746_v33 }
  0x47   : > { %711 = vmatprep.mubr.bf16.mxu1 %v4034_v2 }
  0x4a   : > { %3379 = vmatmul.mubr.bf16.gmra.mrb[12].mxu0 %v3761_v37 }
  0x4e   : > { %712 = vmatmul.mubr.bf16.gmra.mrb[16].mxu1 %v3749_v36 }
  0x4f   : > { %721 = vmatprep.mubr.bf16.mxu1 %v4034_v2 }
  0x56   : > { %722 = vmatmul.mubr.bf16.gmra.mrb[20].mxu1 %v3753_v38 }
  0x57   : > { %731 = vmatprep.mubr.bf16.mxu1 %v4034_v2 }
  0x5e   : > { %732 = vmatmul.mubr.bf16.gmra.mrb[24].mxu1 %v3756_v39 }
  0x5f   : > { %741 = vmatprep.mubr.bf16.mxu1 %v4034_v2 }
  0x66   : > { %742 = vmatmul.mubr.bf16.gmra.mrb[28].mxu1 %v3759_v40 }
 0x101   : > { %v673_v41 = vpop.f32.mrb[0].mxu1 }
 0x102   : > { %v675_v42 = vpop.f32.mrb[1].mxu1 }
 0x103   : > { %v677_v43 = vpop.f32.mrb[2].mxu1 }
 0x104   : > { %v4186_v44 = vpack.c.bf16 %v677_v43, %v673_v41  ;;  %v679_v45 = vpop.f32.mrb[3].mxu1 }
 0x105   : > { %v4188_v46 = vpack.c.bf16 %v679_v45, %v675_v42  ;;  %v3368_v54 = vpop.f32.mrb[0].mxu0 }
 0x106   : > { %1203 = vrot.lane.b32.xlu0 %v4186_v44, %s4035_s29  ;;  %3670 = vmatprep.subr.msk.bf16.mxu0 %vm768_vm0, %v4186_v44  ;;  %v794_v47 = vsel %vm768_vm0, %v4186_v44, 0  ;;  %v424_v56 = vpop.f32.mrb[1].mxu0 }
 0x107   : > { %3383 = vmatpush3.bf16.xpose.msra.mxu0 %v794_v47  ;;  %3414 = vmatprep.subr.bf16.mxu1 %v4188_v46  ;;  %v3369_v57 = vpop.f32.mrb[2].mxu0 }
 0x108   : > { %3415 = vmatpush3.bf16.msra.mxu1 %v4188_v46  ;;  %v4210_v58 = vpack.c.bf16 %v3369_v57, %v3368_v54  ;;  %v427_v59 = vpop.f32.mrb[3].mxu0 }
 0x109   : > { %v683_v48 = vpop.f32.mrb[4].mxu1  ;;  %v4212_v61 = vpack.c.bf16 %v427_v59, %v424_v56 }
 0x10a   : > { %v685_v49 = vpop.f32.mrb[5].mxu1 }
 0x10b   : > { %v687_v50 = vpop.f32.mrb[6].mxu1  ;;  %3398 = vmatprep.mubr.msk.bf16.mxu0 %vm768_vm0, %v4212_v61 }
 0x10c   : > { %v4198_v51 = vpack.c.bf16 %v687_v50, %v683_v48  ;;  %v689_v52 = vpop.f32.mrb[7].mxu1 }
 0x10d   : > { %v4200_v53 = vpack.c.bf16 %v689_v52, %v685_v49  ;;  %v3372_v3 = vpop.f32.mrb[4].mxu0 }
 0x10e   : > { %1205 = vrot.lane.b32.xlu0 %v4198_v51, %s4035_s29  ;;  %3671 = vmatprep.subr.msk.bf16.mxu0 %vm768_vm0, %v4198_v51  ;;  %v797_v55 = vsel %vm768_vm0, %v4198_v51, 0  ;;  %v440_v5 = vpop.f32.mrb[5].mxu0 }
 0x10f   : > { %3385 = vmatpush3.bf16.xpose.msra.mxu0 %v797_v55  ;;  %3416 = vmatprep.subr.bf16.mxu1 %v4200_v53  ;;  %v3373_v6 = vpop.f32.mrb[6].mxu0 }
 0x110   : > { %3417 = vmatpush3.bf16.msra.mxu1 %v4200_v53  ;;  %v4228_v7 = vpack.c.bf16 %v3373_v6, %v3372_v3  ;;  %v443_v8 = vpop.f32.mrb[7].mxu0 }
 0x111   : > { %v693_v60 = vpop.f32.mrb[8].mxu1  ;;  %v4230_v10 = vpack.c.bf16 %v443_v8, %v440_v5 }
 0x112   : > { %v695_v62 = vpop.f32.mrb[9].mxu1 }
 0x113   : > { %v697_v63 = vpop.f32.mrb[10].mxu1 }
 0x114   : > { %v4216_v0 = vpack.c.bf16 %v697_v63, %v693_v60  ;;  %v699_v1 = vpop.f32.mrb[11].mxu1 }
 0x115   : > { %v4218_v2 = vpack.c.bf16 %v699_v1, %v695_v62  ;;  %v3376_v16 = vpop.f32.mrb[8].mxu0 }
 0x116   : > { %1207 = vrot.lane.b32.xlu1 %v4216_v0, %s4035_s29  ;;  %3672 = vmatprep.subr.msk.bf16.mxu0 %vm768_vm0, %v4216_v0  ;;  %v800_v4 = vsel %vm768_vm0, %v4216_v0, 0  ;;  %v456_v18 = vpop.f32.mrb[9].mxu0 }
 0x117   : > { %3387 = vmatpush3.bf16.xpose.msra.mxu0 %v800_v4  ;;  %3418 = vmatprep.subr.bf16.mxu1 %v4218_v2  ;;  %v3377_v19 = vpop.f32.mrb[10].mxu0 }
 0x118   : > { %3419 = vmatpush3.bf16.msra.mxu1 %v4218_v2  ;;  %v4244_v20 = vpack.c.bf16 %v3377_v19, %v3376_v16  ;;  %v459_v21 = vpop.f32.mrb[11].mxu0 }
 0x119   : > { %v703_v9 = vpop.f32.mrb[12].mxu1  ;;  %v4246_v23 = vpack.c.bf16 %v459_v21, %v456_v18 }
 0x11a   : > { %v705_v11 = vpop.f32.mrb[13].mxu1 }
 0x11b   : > { %v707_v12 = vpop.f32.mrb[14].mxu1 }
 0x11c   : > { %v4232_v13 = vpack.c.bf16 %v707_v12, %v703_v9  ;;  %v709_v14 = vpop.f32.mrb[15].mxu1 }
 0x11d   : > { %v4234_v15 = vpack.c.bf16 %v709_v14, %v705_v11  ;;  %v3380_v29 = vpop.f32.mrb[12].mxu0 }
 0x11e   : > { %5429 = vst [vmem:[#allocation2_spill] sm:$0xff] %v4232_v13  ;;  %1209 = vrot.lane.b32.xlu1 %v4232_v13, %s4035_s29  ;;  %3673 = vmatprep.subr.msk.bf16.mxu0 %vm768_vm0, %v4232_v13  ;;  %v803_v17 = vsel %vm768_vm0, %v4232_v13, 0  ;;  %v472_v31 = vpop.f32.mrb[13].mxu0 }
 0x11f   : > { %3389 = vmatpush3.bf16.xpose.msra.mxu0 %v803_v17  ;;  %3420 = vmatprep.subr.bf16.mxu1 %v4234_v15  ;;  %v3381_v32 = vpop.f32.mrb[14].mxu0 }
 0x120   : > { %3421 = vmatpush3.bf16.msra.mxu1 %v4234_v15  ;;  %v4260_v33 = vpack.c.bf16 %v3381_v32, %v3380_v29  ;;  %v475_v34 = vpop.f32.mrb[15].mxu0 }
 0x121   : > { %v713_v22 = vpop.f32.mrb[16].mxu1  ;;  %v4262_v36 = vpack.c.bf16 %v475_v34, %v472_v31 }
 0x122   : > { %v715_v24 = vpop.f32.mrb[17].mxu1 }
 0x123   : > { %v717_v25 = vpop.f32.mrb[18].mxu1 }
 0x124   : > { %v4248_v26 = vpack.c.bf16 %v717_v25, %v713_v22  ;;  %v719_v27 = vpop.f32.mrb[19].mxu1 }
 0x125   : > { %v4250_v28 = vpack.c.bf16 %v719_v27, %v715_v24 }
 0x126   : > { %1211 = vrot.lane.b32.xlu0 %v4248_v26, %s4035_s29  ;;  %3674 = vmatprep.subr.msk.bf16.mxu0 %vm768_vm0, %v4248_v26  ;;  %v806_v30 = vsel %vm768_vm0, %v4248_v26, 0 }
 0x127   : > { %3391 = vmatpush3.bf16.xpose.msra.mxu0 %v806_v30  ;;  %3422 = vmatprep.subr.bf16.mxu1 %v4250_v28 }
 0x128   : > { %3423 = vmatpush3.bf16.msra.mxu1 %v4250_v28 }
 0x129   : > { %v723_v35 = vpop.f32.mrb[20].mxu1 }
 0x12a   : > { %v725_v37 = vpop.f32.mrb[21].mxu1 }
 0x12b   : > { %v727_v38 = vpop.f32.mrb[22].mxu1 }
 0x12c   : > { %v4264_v39 = vpack.c.bf16 %v727_v38, %v723_v35  ;;  %v729_v40 = vpop.f32.mrb[23].mxu1 }
 0x12d   : > { %v4266_v41 = vpack.c.bf16 %v729_v40, %v725_v37 }
 0x12e   : > { %1213 = vrot.lane.b32.xlu1 %v4264_v39, %s4035_s29  ;;  %3675 = vmatprep.subr.msk.bf16.mxu0 %vm768_vm0, %v4264_v39  ;;  %v809_v42 = vsel %vm768_vm0, %v4264_v39, 0 }
 0x12f   : > { %3393 = vmatpush3.bf16.xpose.msra.mxu0 %v809_v42  ;;  %3424 = vmatprep.subr.bf16.mxu1 %v4266_v41 }
 0x130   : > { %3425 = vmatpush3.bf16.msra.mxu1 %v4266_v41 }
 0x131   : > { %v733_v43 = vpop.f32.mrb[24].mxu1 }
 0x132   : > { %v735_v45 = vpop.f32.mrb[25].mxu1 }
 0x133   : > { %v737_v47 = vpop.f32.mrb[26].mxu1 }
 0x134   : > { %v4276_v48 = vpack.c.bf16 %v737_v47, %v733_v43  ;;  %v739_v49 = vpop.f32.mrb[27].mxu1 }
 0x135   : > { %v4278_v50 = vpack.c.bf16 %v739_v49, %v735_v45 }
 0x136   : > { %1215 = vrot.lane.b32.xlu0 %v4276_v48, %s4035_s29  ;;  %3676 = vmatprep.subr.msk.bf16.mxu0 %vm768_vm0, %v4276_v48  ;;  %v812_v52 = vsel %vm768_vm0, %v4276_v48, 0 }
 0x137   : > { %3395 = vmatpush3.bf16.xpose.msra.mxu0 %v812_v52  ;;  %3426 = vmatprep.subr.bf16.mxu1 %v4278_v50 }
 0x138   : > { %3427 = vmatpush3.bf16.msra.mxu1 %v4278_v50 }
 0x139   : > { %v743_v54 = vpop.f32.mrb[28].mxu1 }
 0x13a   : > { %v745_v55 = vpop.f32.mrb[29].mxu1  ;;  %1179 = vrot.lane.b32.xlu0 %v4212_v61, %s4035_s29 }
 0x13b   : > { %v747_v56 = vpop.f32.mrb[30].mxu1 }
 0x13c   : > { %v4290_v57 = vpack.c.bf16 %v747_v56, %v743_v54  ;;  %v749_v59 = vpop.f32.mrb[31].mxu1 }
 0x13d   : > { %v4292_v60 = vpack.c.bf16 %v749_v59, %v745_v55 }
 0x13e   : > { %1217 = vrot.lane.b32.xlu1 %v4290_v57, %s4035_s29  ;;  %3677 = vmatprep.subr.msk.bf16.mxu0 %vm768_vm0, %v4290_v57  ;;  %v815_v62 = vsel %vm768_vm0, %v4290_v57, 0 }
 0x13f   : > { %1183 = vrot.lane.b32.xlu0 %v4230_v10, %s4035_s29  ;;  %3397 = vmatpush3.bf16.xpose.msra.mxu0 %v815_v62 }
 0x140   : > { %3428 = vmatprep.subr.bf16.mxu1 %v4292_v60 }
 0x141   : > { %3429 = vmatpush3.bf16.msra.mxu1 %v4292_v60 }
 0x142   : > { %1181 = vrot.lane.b32.xlu1 %v4210_v58, %s4035_s29 }
 0x143   : > { %1187 = vrot.lane.b32.xlu0 %v4246_v23, %s4035_s29 }
 0x146   : > { %3399 = vmatmul.mubr.msk.bf16.vlgmr.msra.gmra.mrb[16].mxu0 %vm768_vm0, %v4210_v58  ;;  %1185 = vrot.lane.b32.xlu1 %v4228_v7, %s4035_s29 }
 0x147   : > { %1191 = vrot.lane.b32.xlu0 %v4262_v36, %s4035_s29  ;;  %3402 = vmatprep.mubr.msk.bf16.mxu0 %vm768_vm0, %v4230_v10 }
 0x14a   : > { %1189 = vrot.lane.b32.xlu1 %v4244_v20, %s4035_s29 }
 0x14b   : > { %1494 = vrot.lane.b32.xlu0 %v4200_v53, %s4035_s29 }
 0x14e   : > { %3403 = vmatmul.mubr.msk.bf16.gmra.mrb[20].mxu0 %vm768_vm0, %v4228_v7  ;;  %1193 = vrot.lane.b32.xlu1 %v4260_v33, %s4035_s29 }
 0x14f   : > { %1498 = vrot.lane.b32.xlu0 %v4234_v15, %s4035_s29  ;;  %3406 = vmatprep.mubr.msk.bf16.mxu0 %vm768_vm0, %v4246_v23 }
 0x152   : > { %1492 = vrot.lane.b32.xlu1 %v4188_v46, %s4035_s29 }
 0x153   : > { %1504 = vrot.lane.b32.xlu0 %v4278_v50, %s4035_s29 }
 0x156   : > { %3407 = vmatmul.mubr.msk.bf16.gmra.mrb[24].mxu0 %vm768_vm0, %v4244_v20  ;;  %1496 = vrot.lane.b32.xlu1 %v4218_v2, %s4035_s29 }
 0x157   : > { %1669 = vrot.lane.b32.xlu0 %v4186_v44, %s4036_s12  ;;  %3410 = vmatprep.mubr.msk.bf16.mxu0 %vm768_vm0, %v4262_v36 }
 0x15a   : > { %1500 = vrot.lane.b32.xlu1 %v4250_v28, %s4035_s29 }
 0x15b   : > { %1671 = vrot.lane.b32.xlu0 %v4198_v51, %s4036_s12 }
 0x15e   : > { %1502 = vrot.lane.b32.xlu1 %v4266_v41, %s4035_s29  ;;  %3411 = vmatmul.mubr.msk.bf16.gmra.mrb[28].mxu0 %vm768_vm0, %v4260_v33 }
 0x15f   : > { %1675 = vrot.lane.b32.xlu0 %v4232_v13, %s4036_s12 }
 0x162   : > { %1673 = vrot.lane.b32.xlu1 %v4216_v0, %s4036_s12 }
 0x166   : > { %1506 = vrot.lane.b32.xlu1 %v4292_v60, %s4035_s29 }
 0x178   : > { %v1204_v63 = vpop.permute.xlu0 %1203 }
 0x179   : > { %3678 = vmatprep.subr.msk.bf16.mxu0 %vm768_vm0, %v1204_v63  ;;  %v1244_v1 = vsel %vm768_vm0, %v1204_v63, 0 }
 0x17a   : > { %3447 = vmatpush3.bf16.xpose.msra.mxu0 %v1244_v1 }
 0x180   : > { %v1206_v3 = vpop.permute.xlu0 %1205 }
 0x181   : > { %3679 = vmatprep.subr.msk.bf16.mxu0 %vm768_vm0, %v1206_v3  ;;  %v1247_v4 = vsel %vm768_vm0, %v1206_v3, 0 }
 0x182   : > { %3449 = vmatpush3.bf16.xpose.msra.mxu0 %v1247_v4 }
 0x188   : > { %v1208_v5 = vpop.permute.xlu1 %1207 }
 0x189   : > { %3680 = vmatprep.subr.msk.bf16.mxu0 %vm768_vm0, %v1208_v5  ;;  %v1250_v6 = vsel %vm768_vm0, %v1208_v5, 0 }
 0x18a   : > { %3451 = vmatpush3.bf16.xpose.msra.mxu0 %v1250_v6 }
 0x190   : > { %v1210_v8 = vpop.permute.xlu1 %1209 }
 0x191   : > { %3681 = vmatprep.subr.msk.bf16.mxu0 %vm768_vm0, %v1210_v8  ;;  %v1253_v9 = vsel %vm768_vm0, %v1210_v8, 0 }
 0x192   : > { %3453 = vmatpush3.bf16.xpose.msra.mxu0 %v1253_v9 }
 0x198   : > { %v1212_v11 = vpop.permute.xlu0 %1211 }
 0x199   : > { %3682 = vmatprep.subr.msk.bf16.mxu0 %vm768_vm0, %v1212_v11  ;;  %v1256_v12 = vsel %vm768_vm0, %v1212_v11, 0 }
 0x19a   : > { %3455 = vmatpush3.bf16.xpose.msra.mxu0 %v1256_v12 }
 0x1a0   : > { %v1214_v14 = vpop.permute.xlu1 %1213 }
 0x1a1   : > { %3683 = vmatprep.subr.msk.bf16.mxu0 %vm768_vm0, %v1214_v14  ;;  %v1259_v16 = vsel %vm768_vm0, %v1214_v14, 0 }
 0x1a2   : > { %3457 = vmatpush3.bf16.xpose.msra.mxu0 %v1259_v16 }
 0x1a8   : > { %v1216_v17 = vpop.permute.xlu0 %1215 }
 0x1a9   : > { %3684 = vmatprep.subr.msk.bf16.mxu0 %vm768_vm0, %v1216_v17  ;;  %v1262_v18 = vsel %vm768_vm0, %v1216_v17, 0 }
 0x1aa   : > { %3459 = vmatpush3.bf16.xpose.msra.mxu0 %v1262_v18 }
 0x1ac   : > { %v1180_v19 = vpop.permute.xlu0 %1179 }
 0x1ad   : > { %3462 = vmatprep.mubr.msk.bf16.mxu0 %vm768_vm0, %v1180_v19 }
 0x1b0   : > { %v1218_v21 = vpop.permute.xlu1 %1217 }
 0x1b1   : > { %3685 = vmatprep.subr.msk.bf16.mxu0 %vm768_vm0, %v1218_v21  ;;  %v1265_v22 = vsel %vm768_vm0, %v1218_v21, 0  ;;  %v1184_v27 = vpop.permute.xlu0 %1183 }
 0x1b2   : > { %3461 = vmatpush3.bf16.xpose.msra.mxu0 %v1265_v22 }
 0x1b4   : > { %v1182_v24 = vpop.permute.xlu1 %1181 }
 0x1b5   : > { %v1188_v31 = vpop.permute.xlu0 %1187 }
 0x1b8   : > { %v1186_v25 = vpop.permute.xlu1 %1185 }
 0x1b9   : > { %3463 = vmatmul.mubr.msk.bf16.vlgmr.msra.gmra.mrb[32].mxu0 %vm768_vm0, %v1182_v24  ;;  %v1192_v34 = vpop.permute.xlu0 %1191 }
 0x1ba   : > { %3466 = vmatprep.mubr.msk.bf16.mxu0 %vm768_vm0, %v1184_v27 }
 0x1bc   : > { %v1190_v29 = vpop.permute.xlu1 %1189 }
 0x1bd   : > { %v4429_v1 = vpop.permute.xlu0 %1494 }
 0x1c0   : > { %v1194_v30 = vpop.permute.xlu1 %1193 }
 0x1c1   : > { %3467 = vmatmul.mubr.msk.bf16.gmra.mrb[36].mxu0 %vm768_vm0, %v1186_v25  ;;  %v4431_v3 = vpop.permute.xlu0 %1498 }
 0x1c2   : > { %3470 = vmatprep.mubr.msk.bf16.mxu0 %vm768_vm0, %v1188_v31 }
 0x1c4   : > { %v4375_v32 = vpop.permute.xlu1 %1492 }
 0x1c5   : > { %3478 = vmatprep.subr.bf16.mxu1 %v4375_v32  ;;  %v4445_v11 = vpop.permute.xlu0 %1504 }
 0x1c8   : > { %v4438_v6 = vpop.permute.xlu1 %1496 }
 0x1c9   : > { %3471 = vmatmul.mubr.msk.bf16.gmra.mrb[40].mxu0 %vm768_vm0, %v1190_v29  ;;  %v4458_v18 = vpop.permute.xlu0 %1669 }
 0x1ca   : > { %3474 = vmatprep.mubr.msk.bf16.mxu0 %vm768_vm0, %v1192_v34 }
 0x1cc   : > { %v4449_v12 = vpop.permute.xlu1 %1500 }
 0x1cd   : > { %v4468_v24 = vpop.permute.xlu0 %1671 }
 0x1ce   : > { %5439 = vst [vmem:[#allocation12_spill] sm:$0xff] %v4468_v24 }
 0x1d0   : > { %v4464_v21 = vpop.permute.xlu1 %1502 }
 0x1d1   : > { %3475 = vmatmul.mubr.msk.bf16.gmra.mrb[44].mxu0 %vm768_vm0, %v1194_v30  ;;  %v4481_v31 = vpop.permute.xlu0 %1675 }
 0x1d2   : > { %5444 = vst [vmem:[#allocation17_spill] sm:$0xff] %v4481_v31 }
 0x1d4   : > { %v4478_v30 = vpop.permute.xlu1 %1673 }
 0x1d5   : > { %5443 = vst [vmem:[#allocation16_spill] sm:$0xff] %v4478_v30 }
 0x219   : > { %v4381_v35 = vpop.f32.mrb[16].mxu0 }
 0x21a   : > { %v4383_v37 = vpop.f32.mrb[17].mxu0  ;;  %918 = vmax.xlane.f32.xlu0 %v4381_v35 }
 0x21b   : > { %v4386_v38 = vpop.f32.mrb[18].mxu0 }
 0x21c   : > { %v4388_v40 = vpop.f32.mrb[19].mxu0 }
 0x21d   : > { %916 = vmax.xlane.f32.xlu1 %v4388_v40 }
 0x21e   : > { %914 = vmax.xlane.f32.xlu0 %v4383_v37 }
 0x221   : > { %v4392_v42 = vpop.f32.mrb[20].mxu0 }
 0x222   : > { %926 = vmax.xlane.f32.xlu1 %v4392_v42  ;;  %v4395_v43 = vpop.f32.mrb[21].mxu0  ;;  %920 = vmax.xlane.f32.xlu0 %v4386_v38 }
 0x223   : > { %v4398_v45 = vpop.f32.mrb[22].mxu0 }
 0x224   : > { %v4400_v47 = vpop.f32.mrb[23].mxu0 }
 0x226   : > { %922 = vmax.xlane.f32.xlu1 %v4395_v43  ;;  %928 = vmax.xlane.f32.xlu0 %v4398_v45 }
 0x229   : > { %v4404_v49 = vpop.f32.mrb[24].mxu0 }
 0x22a   : > { %934 = vmax.xlane.f32.xlu1 %v4404_v49  ;;  %v4407_v52 = vpop.f32.mrb[25].mxu0  ;;  %924 = vmax.xlane.f32.xlu0 %v4400_v47 }
 0x22b   : > { %v4410_v54 = vpop.f32.mrb[26].mxu0 }
 0x22c   : > { %v4412_v55 = vpop.f32.mrb[27].mxu0 }
 0x22e   : > { %930 = vmax.xlane.f32.xlu1 %v4407_v52  ;;  %936 = vmax.xlane.f32.xlu0 %v4410_v54 }
 0x231   : > { %v4416_v56 = vpop.f32.mrb[28].mxu0 }
 0x232   : > { %932 = vmax.xlane.f32.xlu0 %v4412_v55  ;;  %942 = vmax.xlane.f32.xlu1 %v4416_v56  ;;  %v4420_v59 = vpop.f32.mrb[29].mxu0 }
 0x233   : > { %v4422_v62 = vpop.f32.mrb[30].mxu0 }
 0x234   : > { %v4424_v63 = vpop.f32.mrb[31].mxu0 }
 0x236   : > { %938 = vmax.xlane.f32.xlu1 %v4420_v59  ;;  %944 = vmax.xlane.f32.xlu0 %v4422_v62 }
 0x23a   : > { %940 = vmax.xlane.f32.xlu0 %v4424_v63 }
 0x28c   : > { %v4433_v4 = vpop.f32.mrb[32].mxu0 }
 0x28d   : > { %5430 = vst [vmem:[#allocation3_spill] sm:$0xff] %v4433_v4  ;;  %1368 = vmax.xlane.f32.xlu1 %v4433_v4  ;;  %v4436_v5 = vpop.f32.mrb[33].mxu0 }
 0x28e   : > { %5431 = vst [vmem:[#allocation4_spill] sm:$0xff] %v4436_v5  ;;  %v4440_v8 = vpop.f32.mrb[34].mxu0 }
 0x28f   : > { %5432 = vst [vmem:[#allocation5_spill] sm:$0xff] %v4440_v8  ;;  %1370 = vmax.xlane.f32.xlu0 %v4440_v8  ;;  %v4443_v9 = vpop.f32.mrb[35].mxu0 }
 0x290   : > { %5433 = vst [vmem:[#allocation6_spill] sm:$0xff] %v4443_v9 }
 0x291   : > { %1364 = vmax.xlane.f32.xlu1 %v4436_v5 }
 0x293   : > { %1366 = vmax.xlane.f32.xlu0 %v4443_v9 }
 0x294   : > { %v4451_v14 = vpop.f32.mrb[36].mxu0 }
 0x295   : > { %5434 = vst [vmem:[#allocation7_spill] sm:$0xff] %v4451_v14  ;;  %1376 = vmax.xlane.f32.xlu1 %v4451_v14  ;;  %v4454_v16 = vpop.f32.mrb[37].mxu0 }
 0x296   : > { %5435 = vst [vmem:[#allocation8_spill] sm:$0xff] %v4454_v16  ;;  %v4456_v17 = vpop.f32.mrb[38].mxu0 }
 0x297   : > { %5436 = vst [vmem:[#allocation9_spill] sm:$0xff] %v4456_v17  ;;  %v4460_v19 = vpop.f32.mrb[39].mxu0 }
 0x298   : > { %5437 = vst [vmem:[#allocation10_spill] sm:$0xff] %v4460_v19  ;;  %1374 = vmax.xlane.f32.xlu0 %v4460_v19 }
 0x299   : > { %1372 = vmax.xlane.f32.xlu1 %v4454_v16 }
 0x29c   : > { %v4466_v22 = vpop.f32.mrb[40].mxu0 }
 0x29d   : > { %5438 = vst [vmem:[#allocation11_spill] sm:$0xff] %v4466_v22  ;;  %1378 = vmax.xlane.f32.xlu1 %v4456_v17  ;;  %1384 = vmax.xlane.f32.xlu0 %v4466_v22  ;;  %v4472_v25 = vpop.f32.mrb[41].mxu0  ;;  %v4488_v17 = vpop.permute.xlu1 %1506 }
 0x29e   : > { %5440 = vst [vmem:[#allocation13_spill] sm:$0xff] %v4472_v25  ;;  %v4474_v27 = vpop.f32.mrb[42].mxu0 }
 0x29f   : > { %5441 = vst [vmem:[#allocation14_spill] sm:$0xff] %v4474_v27  ;;  %v4476_v29 = vpop.f32.mrb[43].mxu0 }
 0x2a0   : > { %5442 = vst [vmem:[#allocation15_spill] sm:$0xff] %v4476_v29 }
 0x2a1   : > { %1380 = vmax.xlane.f32.xlu1 %v4472_v25 }
 0x2a4   : > { %v4483_v34 = vpop.f32.mrb[44].mxu0 }
 0x2a5   : > { %1386 = vmax.xlane.f32.xlu1 %v4474_v27  ;;  %v4486_v24 = vpop.f32.mrb[45].mxu0 }
 0x2a6   : > { %5445 = vst [vmem:[#allocation18_spill] sm:$0xff] %v4486_v24  ;;  %1388 = vmax.xlane.f32.xlu0 %v4486_v24  ;;  %v4491_v22 = vpop.f32.mrb[46].mxu0 }
 0x2a7   : > { %v919_v16 = vpop.xlane.xlu0 %918  ;;  %v4493_v19 = vpop.f32.mrb[47].mxu0 }
 0x2a8   : > { %v948_v14 = vsub.f32 %v4381_v35, %v919_v16 }
 0x2a9   : > { %1382 = vmax.xlane.f32.xlu1 %v4476_v29 }
 0x2aa   : > { %v917_v30 = vpop.xlane.xlu1 %916  ;;  %v966_v13 = vmul.f32 1.442695, %v948_v14 }
 0x2ab   : > { %v947_v31 = vsub.f32 %v4388_v40, %v917_v30  ;;  %v915_v25 = vpop.xlane.xlu0 %914 }
 0x2ac   : > { %v946_v27 = vsub.f32 %v4383_v37, %v915_v25 }
 0x2ad   : > { %v964_v9 = vmul.f32 1.442695, %v947_v31  ;;  %1392 = vmax.xlane.f32.xlu1 %v4483_v34 }
 0x2ae   : > { %v962_v5 = vmul.f32 1.442695, %v946_v27 }
 0x2af   : > { %3770 = vpow2.f32 %v964_v9  ;;  %v927_v24 = vpop.xlane.xlu1 %926  ;;  %v921_v4 = vpop.xlane.xlu0 %920 }
 0x2b0   : > { %3772 = vpow2.f32 %v962_v5  ;;  %v949_v8 = vsub.f32 %v4386_v38, %v921_v4  ;;  %v952_v16 = vsub.f32 %v4392_v42, %v927_v24 }
 0x2b1   : > { %1394 = vmax.xlane.f32.xlu1 %v4491_v22  ;;  %3774 = vpow2.f32 %v966_v13 }
 0x2b2   : > { %v968_v29 = vmul.f32 1.442695, %v949_v8  ;;  %v974_v31 = vmul.f32 1.442695, %v952_v16 }
 0x2b3   : > { %v923_v40 = vpop.xlane.xlu1 %922  ;;  %v929_v30 = vpop.xlane.xlu0 %928 }
 0x2b4   : > { %v950_v35 = vsub.f32 %v4395_v43, %v923_v40  ;;  %v953_v37 = vsub.f32 %v4398_v45, %v929_v30  ;;  %3776 = vpow2.f32 %v968_v29 }
 0x2b6   : > { %v970_v9 = vmul.f32 1.442695, %v950_v35  ;;  %v976_v14 = vmul.f32 1.442695, %v953_v37 }
 0x2b7   : > { %v935_v25 = vpop.xlane.xlu1 %934  ;;  %v925_v27 = vpop.xlane.xlu0 %924 }
 0x2b8   : > { %v951_v5 = vsub.f32 %v4400_v47, %v925_v27  ;;  %3778 = vpow2.f32 %v970_v9  ;;  %v956_v40 = vsub.f32 %v4404_v49, %v935_v25 }
 0x2b9   : > { %v4506_v38 = vpop.eup %3770  ;;  %3780 = vpow2.f32 %v976_v14 }
 0x2ba   : > { %v4508_v4 = vpop.eup %3772  ;;  %v972_v8 = vmul.f32 1.442695, %v951_v5 }
 0x2bb   : > { %v931_v13 = vpop.xlane.xlu1 %930  ;;  %v937_v43 = vpop.xlane.xlu0 %936  ;;  %v1026_v45 = vpack.c.bf16 %v4506_v38, %v4508_v4 }
 0x2bc   : > { %v954_v42 = vsub.f32 %v4407_v52, %v931_v13  ;;  %1679 = vrot.lane.b32.xlu0 %v4264_v39, %s4036_s12  ;;  %3782 = vpow2.f32 %v972_v8  ;;  %v957_v47 = vsub.f32 %v4410_v54, %v937_v43  ;;  %v4516_v24 = vpop.eup %3774  ;;  %v982_v54 = vmul.f32 1.442695, %v956_v40 }
 0x2bd   : > { %3430 = vmatprep.mubr.bf16.mxu1 %v1026_v45  ;;  %3784 = vpow2.f32 %v974_v31 }
 0x2be   : > { %v4518_v29 = vpop.eup %3776  ;;  %v978_v30 = vmul.f32 1.442695, %v954_v42  ;;  %v984_v9 = vmul.f32 1.442695, %v957_v47 }
 0x2bf   : > { %v933_v35 = vpop.xlane.xlu0 %932  ;;  %v943_v37 = vpop.xlane.xlu1 %942  ;;  %v1027_v52 = vpack.c.bf16 %v4518_v29, %v4516_v24 }
 0x2c0   : > { %v955_v16 = vsub.f32 %v4412_v55, %v933_v35  ;;  %3786 = vpow2.f32 %v978_v30 }
 0x2c1   : > { %3431 = vmatmul.mubr.bf16.vlgmr.msra.gmra.mrb[32].mxu1 %v1027_v52 }
 0x2c2   : > { %v980_v27 = vmul.f32 1.442695, %v955_v16  ;;  %1677 = vrot.lane.b32.xlu1 %v4248_v26, %s4036_s12  ;;  %3479 = vmatpush3.bf16.msra.mxu1 %v4375_v32  ;;  %v4529_v25 = vpop.eup %3778  ;;  %v960_v32 = vsub.f32 %v4416_v56, %v943_v37 }
 0x2c3   : > { %v939_v14 = vpop.xlane.xlu1 %938  ;;  %v945_v49 = vpop.xlane.xlu0 %944  ;;  %3480 = vmatprep.subr.bf16.mxu1 %v4429_v1 }
 0x2c4   : > { %3788 = vpow2.f32 %v980_v27  ;;  %v958_v55 = vsub.f32 %v4420_v59, %v939_v14  ;;  %v961_v5 = vsub.f32 %v4422_v62, %v945_v49  ;;  %v4532_v8 = vpop.eup %3780  ;;  %v990_v56 = vmul.f32 1.442695, %v960_v32  ;;  %v5454_v14 = vld [vmem:[#allocation3_spill] sm:$0xff]  ;;  %v5455_v32 = vld [vmem:[#allocation4_spill] sm:$0xff] }
 0x2c5   : > { %3790 = vpow2.f32 %v984_v9 }
 0x2c6   : > { %1655 = vrot.lane.b32.xlu1 %v4210_v58, %s4036_s12  ;;  %v4536_v31 = vpop.eup %3782  ;;  %3792 = vpow2.f32 %v982_v54  ;;  %v986_v13 = vmul.f32 1.442695, %v958_v55  ;;  %3481 = vmatpush3.bf16.msra.mxu1 %v4429_v1  ;;  %v992_v42 = vmul.f32 1.442695, %v961_v5  ;;  %v5453_v54 = vld [vmem:[#allocation2_spill] sm:$0xff] }
 0x2c7   : > { %v941_v43 = vpop.xlane.xlu0 %940  ;;  %3482 = vmatprep.subr.bf16.mxu1 %v4438_v6  ;;  %v1028_v62 = vpack.c.bf16 %v4536_v31, %v4529_v25  ;;  %v4544_v45 = vpop.eup %3784 }
 0x2c8   : > { %v959_v59 = vsub.f32 %v4424_v63, %v941_v43  ;;  %v1029_v40 = vpack.c.bf16 %v4532_v8, %v4544_v45  ;;  %3794 = vpow2.f32 %v986_v13 }
 0x2c9   : > { %3434 = vmatprep.mubr.bf16.mxu1 %v1028_v62  ;;  %v5456_v62 = vld [vmem:[#allocation6_spill] sm:$0xff] }
 0x2ca   : > { %v988_v47 = vmul.f32 1.442695, %v959_v59  ;;  %1659 = vrot.lane.b32.xlu1 %v4228_v7, %s4036_s12  ;;  %3483 = vmatpush3.bf16.msra.mxu1 %v4438_v6  ;;  %v4552_v63 = vpop.eup %3786 }
 0x2cb   : > { %3435 = vmatmul.mubr.bf16.gmra.mrb[36].mxu1 %v1029_v40  ;;  %3484 = vmatprep.subr.bf16.mxu1 %v4431_v3 }
 0x2cc   : > { %3796 = vpow2.f32 %v988_v47 }
 0x2cd   : > { %3798 = vpow2.f32 %v992_v42 }
 0x2ce   : > { %v4554_v1 = vpop.eup %3788  ;;  %1663 = vrot.lane.b32.xlu1 %v4244_v20, %s4036_s12  ;;  %3800 = vpow2.f32 %v990_v56  ;;  %3485 = vmatpush3.bf16.msra.mxu1 %v4431_v3  ;;  %v5457_v56 = vld [vmem:[#allocation7_spill] sm:$0xff] }
 0x2cf   : > { %5446 = vst [vmem:[#allocation19_spill] sm:$0xff] %v4554_v1  ;;  %v4558_v30 = vpop.eup %3790  ;;  %v1030_v6 = vpack.c.bf16 %v4554_v1, %v4552_v63  ;;  %3486 = vmatprep.subr.bf16.mxu1 %v4449_v12 }
 0x2d0   : > { %5447 = vst [vmem:[#allocation20_spill] sm:$0xff] %v4558_v30  ;;  %v4564_v35 = vpop.eup %3792 }
 0x2d1   : > { %3438 = vmatprep.mubr.bf16.mxu1 %v1030_v6  ;;  %v1031_v37 = vpack.c.bf16 %v4558_v30, %v4564_v35 }
 0x2d2   : > { %1667 = vrot.lane.b32.xlu1 %v4260_v33, %s4036_s12  ;;  %3487 = vmatpush3.bf16.msra.mxu1 %v4449_v12  ;;  %v4572_v3 = vpop.eup %3794 }
 0x2d3   : > { %3439 = vmatmul.mubr.bf16.gmra.mrb[40].mxu1 %v1031_v37  ;;  %3488 = vmatprep.subr.bf16.mxu1 %v4464_v21  ;;  %5448 = vst [vmem:[#allocation21_spill] sm:$0xff] %v4572_v3  ;;  %v5458_v37 = vld [vmem:[#allocation10_spill] sm:$0xff] }
 0x2d6   : > { %v4574_v16 = vpop.eup %3796  ;;  %1952 = vrot.lane.b32.xlu1 %v4200_v53, %s4036_s12  ;;  %3489 = vmatpush3.bf16.msra.mxu1 %v4464_v21 }
 0x2d7   : > { %5449 = vst [vmem:[#allocation22_spill] sm:$0xff] %v4574_v16  ;;  %v4578_v52 = vpop.eup %3798  ;;  %v1032_v9 = vpack.c.bf16 %v4574_v16, %v4572_v3  ;;  %3490 = vmatprep.subr.bf16.mxu1 %v4445_v11 }
 0x2d8   : > { %5450 = vst [vmem:[#allocation23_spill] sm:$0xff] %v4578_v52  ;;  %v4584_v12 = vpop.eup %3800 }
 0x2d9   : > { %5451 = vst [vmem:[#allocation24_spill] sm:$0xff] %v4584_v12  ;;  %3442 = vmatprep.mubr.bf16.mxu1 %v1032_v9  ;;  %v1033_v27 = vpack.c.bf16 %v4578_v52, %v4584_v12 }
 0x2da   : > { %1954 = vrot.lane.b32.xlu1 %v4218_v2, %s4036_s12  ;;  %3491 = vmatpush3.bf16.msra.mxu1 %v4445_v11 }
 0x2db   : > { %1390 = vmax.xlane.f32.xlu0 %v4493_v19  ;;  %3443 = vmatmul.mubr.bf16.gmra.mrb[44].mxu1 %v1033_v27 }
 0x2dc   : > { %3492 = vmatprep.subr.bf16.mxu1 %v4488_v17 }
 0x2de   : > { %1958 = vrot.lane.b32.xlu1 %v4250_v28, %s4036_s12  ;;  %3493 = vmatpush3.bf16.msra.mxu1 %v4488_v17  ;;  %v5452_v17 = vld [vmem:[#allocation5_spill] sm:$0xff] }
 0x2df   : > { %3686 = vmatprep.subr.msk.bf16.mxu1 %vm768_vm0, %v4458_v18 }
 0x2e2   : > { %1960 = vrot.lane.b32.xlu1 %v4266_v41, %s4036_s12 }
 0x2e6   : > { %1964 = vrot.lane.b32.xlu1 %v4292_v60, %s4036_s12 }
 0x2ea   : > { %2131 = vrot.lane.b32.xlu1 %v4216_v0, %s4037_s6 }
 0x2f1   : > { %1681 = vrot.lane.b32.xlu0 %v4276_v48, %s4036_s12 }
 0x2f5   : > { %1683 = vrot.lane.b32.xlu0 %v4290_v57, %s4036_s12 }
 0x2f9   : > { %1653 = vrot.lane.b32.xlu0 %v4212_v61, %s4036_s12 }
 0x2fd   : > { %1657 = vrot.lane.b32.xlu0 %v4230_v10, %s4036_s12 }
 0x301   : > { %1661 = vrot.lane.b32.xlu0 %v4246_v23, %s4036_s12 }
 0x305   : > { %1665 = vrot.lane.b32.xlu0 %v4262_v36, %s4036_s12 }
 0x309   : > { %1950 = vrot.lane.b32.xlu0 %v4188_v46, %s4036_s12 }
 0x30d   : > { %1956 = vrot.lane.b32.xlu0 %v4234_v15, %s4036_s12 }
 0x311   : > { %1962 = vrot.lane.b32.xlu0 %v4278_v50, %s4036_s12 }
 0x315   : > { %2127 = vrot.lane.b32.xlu0 %v4186_v44, %s4037_s6 }
 0x319   : > { %2129 = vrot.lane.b32.xlu0 %v4198_v51, %s4037_s6 }
 0x31a   : > { %v1369_v0 = vpop.xlane.xlu1 %1368 }
 0x31b   : > { %v1398_v49 = vsub.f32 %v5454_v14, %v1369_v0  ;;  %v5459_v0 = vld [vmem:[#allocation8_spill] sm:$0xff] }
 0x31c   : > { %v1371_v11 = vpop.xlane.xlu0 %1370 }
 0x31d   : > { %v1399_v21 = vsub.f32 %v5452_v17, %v1371_v11  ;;  %2133 = vrot.lane.b32.xlu0 %v5453_v54, %s4037_s6  ;;  %v1416_v42 = vmul.f32 1.442695, %v1398_v49  ;;  %v5460_v49 = vld [vmem:[#allocation9_spill] sm:$0xff] }
 0x31e   : > { %v1365_v55 = vpop.xlane.xlu1 %1364 }
 0x31f   : > { %v1418_v5 = vmul.f32 1.442695, %v1399_v21  ;;  %v1396_v13 = vsub.f32 %v5455_v32, %v1365_v55 }
 0x320   : > { %v1367_v43 = vpop.xlane.xlu0 %1366 }
 0x321   : > { %v1412_v59 = vmul.f32 1.442695, %v1396_v13  ;;  %v1397_v44 = vsub.f32 %v5456_v62, %v1367_v43  ;;  %3802 = vpow2.f32 %v1418_v5 }
 0x322   : > { %v1377_v47 = vpop.xlane.xlu1 %1376 }
 0x323   : > { %v1414_v51 = vmul.f32 1.442695, %v1397_v44  ;;  %3804 = vpow2.f32 %v1412_v59  ;;  %v1402_v6 = vsub.f32 %v5457_v56, %v1377_v47  ;;  %v5461_v47 = vld [vmem:[#allocation13_spill] sm:$0xff] }
 0x325   : > { %3806 = vpow2.f32 %v1414_v51  ;;  %v1375_v40 = vpop.xlane.xlu0 %1374  ;;  %v1424_v54 = vmul.f32 1.442695, %v1402_v6  ;;  %v5462_v6 = vld [vmem:[#allocation14_spill] sm:$0xff] }
 0x326   : > { %3808 = vpow2.f32 %v1416_v42  ;;  %v1401_v9 = vsub.f32 %v5458_v37, %v1375_v40  ;;  %v1373_v27 = vpop.xlane.xlu1 %1372 }
 0x327   : > { %v1400_v11 = vsub.f32 %v5459_v0, %v1373_v27  ;;  %v5463_v0 = vld [vmem:[#allocation11_spill] sm:$0xff] }
 0x328   : > { %v1422_v17 = vmul.f32 1.442695, %v1401_v9  ;;  %v1710_v9 = vsel %vm768_vm0, %v4458_v18, 0 }
 0x329   : > { %v1420_v21 = vmul.f32 1.442695, %v1400_v11 }
 0x32a   : > { %3810 = vpow2.f32 %v1422_v17  ;;  %v1379_v14 = vpop.xlane.xlu1 %1378  ;;  %v1385_v42 = vpop.xlane.xlu0 %1384 }
 0x32b   : > { %3812 = vpow2.f32 %v1420_v21  ;;  %v1403_v55 = vsub.f32 %v5460_v49, %v1379_v14  ;;  %v4636_v5 = vpop.eup %3802  ;;  %v1406_v11 = vsub.f32 %v5463_v0, %v1385_v42 }
 0x32c   : > { %3814 = vpow2.f32 %v1424_v54  ;;  %v5464_v54 = vld [vmem:[#allocation12_spill] sm:$0xff] }
 0x32d   : > { %v1426_v32 = vmul.f32 1.442695, %v1403_v55  ;;  %v4638_v13 = vpop.eup %3804  ;;  %v1432_v18 = vmul.f32 1.442695, %v1406_v11 }
 0x32e   : > { %v1381_v43 = vpop.xlane.xlu1 %1380 }
 0x32f   : > { %v4640_v59 = vpop.eup %3806  ;;  %3816 = vpow2.f32 %v1426_v32  ;;  %v1404_v51 = vsub.f32 %v5461_v47, %v1381_v43  ;;  %v5465_v32 = vld [vmem:[#allocation15_spill] sm:$0xff] }
 0x330   : > { %v4642_v62 = vpop.eup %3808  ;;  %v1476_v44 = vpack.c.bf16 %v4640_v59, %v4638_v13 }
 0x331   : > { %v1477_v40 = vpack.c.bf16 %v4636_v5, %v4642_v62  ;;  %v1428_v21 = vmul.f32 1.442695, %v1404_v51 }
 0x332   : > { %3494 = vmatprep.mubr.bf16.mxu1 %v1476_v44  ;;  %v1387_v56 = vpop.xlane.xlu1 %1386 }
 0x333   : > { %v1407_v37 = vsub.f32 %v5462_v6, %v1387_v56  ;;  %3495 = vmatmul.mubr.bf16.vlgmr.msra.gmra.mrb[48].mxu1 %v1477_v40  ;;  %3818 = vpow2.f32 %v1428_v21  ;;  %v1713_v40 = vsel %vm768_vm0, %v5464_v54, 0  ;;  %v5466_v56 = vld [vmem:[#allocation16_spill] sm:$0xff]  ;;  %v5467_v21 = vld [vmem:[#allocation17_spill] sm:$0xff] }
 0x334   : > { %v4652_v27 = vpop.eup %3810  ;;  %3511 = vmatpush3.bf16.xpose.msra.mxu1 %v1710_v9  ;;  %v1716_v9 = vsel %vm768_vm0, %v5466_v56, 0 }
 0x335   : > { %v4655_v17 = vpop.eup %3812  ;;  %3687 = vmatprep.subr.msk.bf16.mxu1 %vm768_vm0, %v5464_v54  ;;  %v1434_v14 = vmul.f32 1.442695, %v1407_v37 }
 0x336   : > { %v1383_v49 = vpop.xlane.xlu1 %1382  ;;  %v1478_v55 = vpack.c.bf16 %v4652_v27, %v4655_v17  ;;  %v4662_v44 = vpop.eup %3814 }
 0x337   : > { %v1405_v43 = vsub.f32 %v5465_v32, %v1383_v49  ;;  %3820 = vpow2.f32 %v1434_v14  ;;  %v1719_v32 = vsel %vm768_vm0, %v5467_v21, 0 }
 0x338   : > { %3498 = vmatprep.mubr.bf16.mxu1 %v1478_v55 }
 0x339   : > { %v4664_v47 = vpop.eup %3816  ;;  %v1430_v42 = vmul.f32 1.442695, %v1405_v43 }
 0x33a   : > { %v1479_v51 = vpack.c.bf16 %v4664_v47, %v4662_v44  ;;  %v1393_v6 = vpop.xlane.xlu1 %1392 }
 0x33b   : > { %3822 = vpow2.f32 %v1430_v42 }
 0x33c   : > { %3824 = vpow2.f32 %v1432_v18  ;;  %3513 = vmatpush3.bf16.xpose.msra.mxu1 %v1713_v40  ;;  %v1389_v18 = vpop.xlane.xlu0 %1388 }
 0x33d   : > { %3499 = vmatmul.mubr.bf16.gmra.mrb[52].mxu1 %v1479_v51  ;;  %3688 = vmatprep.subr.msk.bf16.mxu1 %vm768_vm0, %v5466_v56  ;;  %v4672_v37 = vpop.eup %3818  ;;  %v5468_v56 = vld [vmem:[#allocation18_spill] sm:$0xff] }
 0x33e   : > { %v1395_v14 = vpop.xlane.xlu1 %1394 }
 0x340   : > { %v1680_v51 = vpop.permute.xlu0 %1679 }
 0x341   : > { %v4676_v0 = vpop.eup %3820  ;;  %v1725_v40 = vsel %vm768_vm0, %v1680_v51, 0 }
 0x342   : > { %v1678_v43 = vpop.permute.xlu1 %1677 }
 0x343   : > { %v1722_v42 = vsel %vm768_vm0, %v1678_v43, 0 }
 0x344   : > { %3515 = vmatpush3.bf16.xpose.msra.mxu1 %v1716_v9  ;;  %v1408_v9 = vsub.f32 %v5468_v56, %v1389_v18 }
 0x345   : > { %v4678_v11 = vpop.eup %3822  ;;  %3689 = vmatprep.subr.msk.bf16.mxu1 %vm768_vm0, %v5467_v21  ;;  %v1410_v21 = vsub.f32 %v4483_v34, %v1393_v6 }
 0x346   : > { %v4682_v54 = vpop.eup %3824  ;;  %v1480_v49 = vpack.c.bf16 %v4678_v11, %v4672_v37 }
 0x347   : > { %v1481_v55 = vpack.c.bf16 %v4676_v0, %v4682_v54  ;;  %v1440_v30 = vmul.f32 1.442695, %v1410_v21 }
 0x348   : > { %3502 = vmatprep.mubr.bf16.mxu1 %v1480_v49  ;;  %v1411_v49 = vsub.f32 %v4491_v22, %v1395_v14 }
 0x349   : > { %3503 = vmatmul.mubr.bf16.gmra.mrb[56].mxu1 %v1481_v55  ;;  %v1436_v55 = vmul.f32 1.442695, %v1408_v9 }
 0x34b   : > { %3826 = vpow2.f32 %v1436_v55 }
 0x34c   : > { %3517 = vmatpush3.bf16.xpose.msra.mxu1 %v1719_v32  ;;  %v1442_v32 = vmul.f32 1.442695, %v1411_v49 }
 0x34d   : > { %3690 = vmatprep.subr.msk.bf16.mxu1 %vm768_vm0, %v1678_v43 }
 0x34e   : > { %3828 = vpow2.f32 %v1442_v32 }
 0x354   : > { %3519 = vmatpush3.bf16.xpose.msra.mxu1 %v1722_v42  ;;  %v1656_v42 = vpop.permute.xlu1 %1655 }
 0x355   : > { %3691 = vmatprep.subr.msk.bf16.mxu1 %vm768_vm0, %v1680_v51  ;;  %v4701_v14 = vpop.eup %3826 }
 0x358   : > { %v1660_v34 = vpop.permute.xlu1 %1659 }
 0x35c   : > { %3521 = vmatpush3.bf16.xpose.msra.mxu1 %v1725_v40  ;;  %v1664_v40 = vpop.permute.xlu1 %1663 }
 0x360   : > { %v1668_v49 = vpop.permute.xlu1 %1667 }
 0x364   : > { %v1953_v55 = vpop.permute.xlu1 %1952 }
 0x368   : > { %v1391_v52 = vpop.xlane.xlu0 %1390 }
 0x369   : > { %v1409_v16 = vsub.f32 %v4493_v19, %v1391_v52 }
 0x36b   : > { %v1438_v43 = vmul.f32 1.442695, %v1409_v16  ;;  %v4704_v16 = vpop.eup %3828 }
 0x36c   : > { %v1682_v1 = vpop.permute.xlu0 %1681 }
 0x36d   : > { %3830 = vpow2.f32 %v1438_v43  ;;  %3692 = vmatprep.subr.msk.bf16.mxu1 %vm768_vm0, %v1682_v1  ;;  %v1728_v18 = vsel %vm768_vm0, %v1682_v1, 0  ;;  %v1955_v43 = vpop.permute.xlu1 %1954 }
 0x36e   : > { %3832 = vpow2.f32 %v1440_v30  ;;  %3523 = vmatpush3.bf16.xpose.msra.mxu1 %v1728_v18 }
 0x370   : > { %v1684_v22 = vpop.permute.xlu0 %1683 }
 0x371   : > { %3693 = vmatprep.subr.msk.bf16.mxu1 %vm768_vm0, %v1684_v22  ;;  %v1731_v19 = vsel %vm768_vm0, %v1684_v22, 0  ;;  %v1959_v22 = vpop.permute.xlu1 %1958 }
 0x374   : > { %v1654_v6 = vpop.permute.xlu0 %1653 }
 0x376   : > { %3525 = vmatpush3.bf16.xpose.msra.mxu1 %v1731_v19 }
 0x377   : > { %v4706_v52 = vpop.eup %3830 }
 0x378   : > { %v4708_v51 = vpop.eup %3832  ;;  %v1658_v1 = vpop.permute.xlu0 %1657  ;;  %v1482_v30 = vpack.c.bf16 %v4706_v52, %v4701_v14 }
 0x379   : > { %v1483_v56 = vpack.c.bf16 %v4704_v16, %v4708_v51 }
 0x37a   : > { %3506 = vmatprep.mubr.bf16.mxu1 %v1482_v30 }
 0x37b   : > { %3507 = vmatmul.mubr.bf16.gmra.mrb[60].mxu1 %v1483_v56 }
 0x37c   : > { %3526 = vmatprep.mubr.msk.bf16.mxu1 %vm768_vm0, %v1654_v6  ;;  %v1662_v9 = vpop.permute.xlu0 %1661  ;;  %v1961_v6 = vpop.permute.xlu1 %1960 }
 0x380   : > { %v1666_v21 = vpop.permute.xlu0 %1665 }
 0x383   : > { %3527 = vmatmul.mubr.msk.bf16.vlgmr.msra.gmra.mrb[64].mxu1 %vm768_vm0, %v1656_v42 }
 0x384   : > { %3530 = vmatprep.mubr.msk.bf16.mxu1 %vm768_vm0, %v1658_v1  ;;  %v1951_v32 = vpop.permute.xlu0 %1950 }
 0x385   : > { %3542 = vmatprep.subr.bf16.mxu0 %v1951_v32 }
 0x386   : > { %3543 = vmatpush3.bf16.msra.mxu0 %v1951_v32 }
 0x387   : > { %3544 = vmatprep.subr.bf16.mxu0 %v1953_v55 }
 0x388   : > { %v1957_v18 = vpop.permute.xlu0 %1956 }
 0x38a   : > { %3545 = vmatpush3.bf16.msra.mxu0 %v1953_v55 }
 0x38b   : > { %3531 = vmatmul.mubr.msk.bf16.gmra.mrb[68].mxu1 %vm768_vm0, %v1660_v34  ;;  %3546 = vmatprep.subr.bf16.mxu0 %v1955_v43 }
 0x38c   : > { %3534 = vmatprep.mubr.msk.bf16.mxu1 %vm768_vm0, %v1662_v9  ;;  %v1963_v30 = vpop.permute.xlu0 %1962 }
 0x38e   : > { %3547 = vmatpush3.bf16.msra.mxu0 %v1955_v43 }
 0x38f   : > { %3548 = vmatprep.subr.bf16.mxu0 %v1957_v18 }
 0x390   : > { %v4736_v55 = vpop.permute.xlu0 %2127 }
 0x392   : > { %3549 = vmatpush3.bf16.msra.mxu0 %v1957_v18 }
 0x393   : > { %3535 = vmatmul.mubr.msk.bf16.gmra.mrb[72].mxu1 %vm768_vm0, %v1664_v40  ;;  %3550 = vmatprep.subr.bf16.mxu0 %v1959_v22  ;;  %v1965_v40 = vpop.permute.xlu1 %1964 }
 0x394   : > { %3538 = vmatprep.mubr.msk.bf16.mxu1 %vm768_vm0, %v1666_v21  ;;  %v4721_v42 = vpop.f32.mrb[32].mxu1 }
 0x395   : > { %5469 = vst [vmem:[#allocation5_spill] sm:$0xff] %v4721_v42  ;;  %v4723_v19 = vpop.f32.mrb[33].mxu1 }
 0x396   : > { %5470 = vst [vmem:[#allocation2_spill] sm:$0xff] %v4723_v19  ;;  %3551 = vmatpush3.bf16.msra.mxu0 %v1959_v22  ;;  %v4725_v34 = vpop.f32.mrb[34].mxu1 }
 0x397   : > { %5471 = vst [vmem:[#allocation3_spill] sm:$0xff] %v4725_v34  ;;  %3552 = vmatprep.subr.bf16.mxu0 %v1961_v6  ;;  %v4727_v1 = vpop.f32.mrb[35].mxu1 }
 0x398   : > { %5472 = vst [vmem:[#allocation4_spill] sm:$0xff] %v4727_v1 }
 0x39a   : > { %3553 = vmatpush3.bf16.msra.mxu0 %v1961_v6 }
 0x39b   : > { %3539 = vmatmul.mubr.msk.bf16.gmra.mrb[76].mxu1 %vm768_vm0, %v1668_v49  ;;  %3554 = vmatprep.subr.bf16.mxu0 %v1963_v30 }
 0x39e   : > { %3555 = vmatpush3.bf16.msra.mxu0 %v1963_v30  ;;  %v4730_v56 = vpop.f32.mrb[36].mxu1 }
 0x39f   : > { %5473 = vst [vmem:[#allocation6_spill] sm:$0xff] %v4730_v56  ;;  %3556 = vmatprep.subr.bf16.mxu0 %v1965_v40  ;;  %v4732_v9 = vpop.f32.mrb[37].mxu1 }
 0x3a0   : > { %5474 = vst [vmem:[#allocation7_spill] sm:$0xff] %v4732_v9  ;;  %v4734_v21 = vpop.f32.mrb[38].mxu1 }
 0x3a1   : > { %5475 = vst [vmem:[#allocation10_spill] sm:$0xff] %v4734_v21  ;;  %v4738_v32 = vpop.f32.mrb[39].mxu1 }
 0x3a2   : > { %5476 = vst [vmem:[#allocation8_spill] sm:$0xff] %v4738_v32  ;;  %3557 = vmatpush3.bf16.msra.mxu0 %v1965_v40 }
 0x3a3   : > { %3694 = vmatprep.subr.msk.bf16.mxu0 %vm768_vm0, %v4736_v55 }
 0x3a6   : > { %v4742_v43 = vpop.f32.mrb[40].mxu1 }
 0x3a7   : > { %5477 = vst [vmem:[#allocation9_spill] sm:$0xff] %v4742_v43  ;;  %v4744_v49 = vpop.f32.mrb[41].mxu1 }
 0x3a8   : > { %5478 = vst [vmem:[#allocation13_spill] sm:$0xff] %v4744_v49  ;;  %v4746_v18 = vpop.f32.mrb[42].mxu1 }
 0x3a9   : > { %5479 = vst [vmem:[#allocation14_spill] sm:$0xff] %v4746_v18  ;;  %v4748_v22 = vpop.f32.mrb[43].mxu1 }
 0x3aa   : > { %5480 = vst [vmem:[#allocation11_spill] sm:$0xff] %v4748_v22 }
 0x3ae   : > { %v4750_v6 = vpop.f32.mrb[44].mxu1 }
 0x3af   : > { %5481 = vst [vmem:[#allocation12_spill] sm:$0xff] %v4750_v6  ;;  %v4752_v30 = vpop.f32.mrb[45].mxu1 }
 0x3b0   : > { %5482 = vst [vmem:[#allocation15_spill] sm:$0xff] %v4752_v30  ;;  %v4754_v21 = vpop.f32.mrb[46].mxu1 }
 0x3b1   : > { %5483 = vst [vmem:[#allocation16_spill] sm:$0xff] %v4754_v21  ;;  %v4756_v34 = vpop.f32.mrb[47].mxu1 }
 0x3b2   : > { %5484 = vst [vmem:[#allocation17_spill] sm:$0xff] %v4756_v34 }
 0x406   : > { %v4758_v40 = vpop.f32.mrb[48].mxu1 }
 0x407   : > { %5485 = vst [vmem:[#allocation18_spill] sm:$0xff] %v4758_v40  ;;  %v4760_v32 = vpop.f32.mrb[49].mxu1 }
 0x408   : > { %5486 = vst [vmem:[#allocation25_spill] sm:$0xff] %v4760_v32  ;;  %v4762_v1 = vpop.f32.mrb[50].mxu1 }
 0x409   : > { %5487 = vst [vmem:[#allocation26_spill] sm:$0xff] %v4762_v1  ;;  %v4764_v43 = vpop.f32.mrb[51].mxu1 }
 0x40a   : > { %5488 = vst [vmem:[#allocation27_spill] sm:$0xff] %v4764_v43 }
 0x410   : > { %v4766_v49 = vpop.f32.mrb[52].mxu1 }
 0x411   : > { %5489 = vst [vmem:[#allocation28_spill] sm:$0xff] %v4766_v49  ;;  %v4768_v18 = vpop.f32.mrb[53].mxu1 }
 0x412   : > { %5490 = vst [vmem:[#allocation29_spill] sm:$0xff] %v4768_v18  ;;  %v4770_v22 = vpop.f32.mrb[54].mxu1 }
 0x413   : > { %5491 = vst [vmem:[#allocation30_spill] sm:$0xff] %v4770_v22  ;;  %v4772_v6 = vpop.f32.mrb[55].mxu1 }
 0x414   : > { %5492 = vst [vmem:[#allocation31_spill] sm:$0xff] %v4772_v6 }
 0x41c   : > { %v4774_v30 = vpop.f32.mrb[56].mxu1 }
 0x41d   : > { %5493 = vst [vmem:[#allocation32_spill] sm:$0xff] %v4774_v30  ;;  %v4776_v21 = vpop.f32.mrb[57].mxu1 }
 0x41e   : > { %5494 = vst [vmem:[#allocation33_spill] sm:$0xff] %v4776_v21  ;;  %v4778_v34 = vpop.f32.mrb[58].mxu1 }
 0x41f   : > { %5495 = vst [vmem:[#allocation34_spill] sm:$0xff] %v4778_v34  ;;  %v4780_v56 = vpop.f32.mrb[59].mxu1 }
 0x420   : > { %5496 = vst [vmem:[#allocation35_spill] sm:$0xff] %v4780_v56 }
 0x44e   : > { %v4782_v9 = vpop.f32.mrb[60].mxu1 }
 0x44f   : > { %5497 = vst [vmem:[#allocation36_spill] sm:$0xff] %v4782_v9  ;;  %v4784_v42 = vpop.f32.mrb[61].mxu1 }
 0x450   : > { %5498 = vst [vmem:[#allocation37_spill] sm:$0xff] %v4784_v42  ;;  %v4786_v19 = vpop.f32.mrb[62].mxu1 }
 0x451   : > { %5499 = vst [vmem:[#allocation38_spill] sm:$0xff] %v4786_v19  ;;  %v4788_v49 = vpop.f32.mrb[63].mxu1 }
 0x452   : > { %5500 = vst [vmem:[#allocation39_spill] sm:$0xff] %v4788_v49 }
 0x456   : > { %v4790_v18 = vpop.f32.mrb[64].mxu1 }
 0x457   : > { %1834 = vmax.xlane.f32.xlu0 %v4790_v18  ;;  %v1767_v22 = vpop.f32.mrb[65].mxu1 }
 0x458   : > { %v4793_v30 = vpop.f32.mrb[66].mxu1 }
 0x459   : > { %v1770_v21 = vpop.f32.mrb[67].mxu1 }
 0x45a   : > { %1832 = vmax.xlane.f32.xlu1 %v1770_v21 }
 0x45b   : > { %1830 = vmax.xlane.f32.xlu0 %v1767_v22 }
 0x45e   : > { %v4795_v34 = vpop.f32.mrb[68].mxu1 }
 0x45f   : > { %1836 = vmax.xlane.f32.xlu0 %v4793_v30  ;;  %1842 = vmax.xlane.f32.xlu1 %v4795_v34  ;;  %v4799_v9 = vpop.f32.mrb[69].mxu1 }
 0x460   : > { %v4801_v19 = vpop.f32.mrb[70].mxu1 }
 0x461   : > { %v4803_v49 = vpop.f32.mrb[71].mxu1 }
 0x463   : > { %1838 = vmax.xlane.f32.xlu1 %v4799_v9  ;;  %1840 = vmax.xlane.f32.xlu0 %v4803_v49 }
 0x466   : > { %v4807_v42 = vpop.f32.mrb[72].mxu1 }
 0x467   : > { %1844 = vmax.xlane.f32.xlu1 %v4801_v19  ;;  %1850 = vmax.xlane.f32.xlu0 %v4807_v42  ;;  %v4811_v56 = vpop.f32.mrb[73].mxu1 }
 0x468   : > { %v4813_v6 = vpop.f32.mrb[74].mxu1 }
 0x469   : > { %v4815_v43 = vpop.f32.mrb[75].mxu1 }
 0x46b   : > { %1846 = vmax.xlane.f32.xlu1 %v4811_v56 }
 0x46e   : > { %v4818_v32 = vpop.f32.mrb[76].mxu1 }
 0x46f   : > { %1852 = vmax.xlane.f32.xlu1 %v4813_v6  ;;  %v4821_v1 = vpop.f32.mrb[77].mxu1 }
 0x470   : > { %1854 = vmax.xlane.f32.xlu0 %v4821_v1  ;;  %v4824_v40 = vpop.f32.mrb[78].mxu1 }
 0x471   : > { %v4826_v12 = vpop.f32.mrb[79].mxu1 }
 0x473   : > { %1848 = vmax.xlane.f32.xlu1 %v4815_v43 }
 0x477   : > { %1858 = vmax.xlane.f32.xlu1 %v4818_v32 }
 0x47b   : > { %1860 = vmax.xlane.f32.xlu1 %v4824_v40 }
 0x486   : > { %2137 = vrot.lane.b32.xlu0 %v4264_v39, %s4037_s6 }
 0x48c   : > { %2135 = vrot.lane.b32.xlu1 %v4248_v26, %s4037_s6 }
 0x490   : > { %2113 = vrot.lane.b32.xlu1 %v4210_v58, %s4037_s6 }
 0x494   : > { %2117 = vrot.lane.b32.xlu1 %v4228_v7, %s4037_s6 }
 0x498   : > { %2121 = vrot.lane.b32.xlu1 %v4244_v20, %s4037_s6 }
 0x49c   : > { %2125 = vrot.lane.b32.xlu1 %v4260_v33, %s4037_s6 }
 0x4a0   : > { %2410 = vrot.lane.b32.xlu1 %v4200_v53, %s4037_s6  ;;  %v4866_v53 = vpop.permute.xlu0 %2129 }
 0x4a4   : > { %2414 = vrot.lane.b32.xlu1 %v4234_v15, %s4037_s6  ;;  %v4870_v58 = vpop.permute.xlu0 %2133 }
 0x4a5   : > { %1856 = vmax.xlane.f32.xlu0 %v4826_v12 }
 0x4a8   : > { %2418 = vrot.lane.b32.xlu1 %v4266_v41, %s4037_s6 }
 0x4bb   : > { %2139 = vrot.lane.b32.xlu0 %v4276_v48, %s4037_s6 }
 0x4bf   : > { %2141 = vrot.lane.b32.xlu0 %v4290_v57, %s4037_s6 }
 0x4c3   : > { %2111 = vrot.lane.b32.xlu0 %v4212_v61, %s4037_s6  ;;  %v4872_v61 = vpop.permute.xlu1 %2131 }
 0x4c7   : > { %2115 = vrot.lane.b32.xlu0 %v4230_v10, %s4037_s6 }
 0x4cb   : > { %2119 = vrot.lane.b32.xlu0 %v4246_v23, %s4037_s6 }
 0x4cf   : > { %2123 = vrot.lane.b32.xlu0 %v4262_v36, %s4037_s6 }
 0x4d3   : > { %2408 = vrot.lane.b32.xlu0 %v4188_v46, %s4037_s6 }
 0x4d7   : > { %2412 = vrot.lane.b32.xlu0 %v4218_v2, %s4037_s6 }
 0x4db   : > { %2416 = vrot.lane.b32.xlu0 %v4250_v28, %s4037_s6 }
 0x4e4   : > { %v1835_v7 = vpop.xlane.xlu0 %1834 }
 0x4e5   : > { %v1864_v23 = vsub.f32 %v4790_v18, %v1835_v7 }
 0x4e7   : > { %v1833_v10 = vpop.xlane.xlu1 %1832  ;;  %v1882_v39 = vmul.f32 1.442695, %v1864_v23 }
 0x4e8   : > { %v1863_v15 = vsub.f32 %v1770_v21, %v1833_v10  ;;  %v1831_v20 = vpop.xlane.xlu0 %1830 }
 0x4e9   : > { %v1862_v26 = vsub.f32 %v1767_v22, %v1831_v20 }
 0x4ea   : > { %v1880_v46 = vmul.f32 1.442695, %v1863_v15 }
 0x4eb   : > { %v1878_v33 = vmul.f32 1.442695, %v1862_v26 }
 0x4ec   : > { %3834 = vpow2.f32 %v1880_v46  ;;  %v1843_v2 = vpop.xlane.xlu1 %1842  ;;  %v1837_v36 = vpop.xlane.xlu0 %1836 }
 0x4ed   : > { %3836 = vpow2.f32 %v1878_v33  ;;  %v1865_v28 = vsub.f32 %v4793_v30, %v1837_v36  ;;  %v1868_v48 = vsub.f32 %v4795_v34, %v1843_v2 }
 0x4ee   : > { %3838 = vpow2.f32 %v1882_v39 }
 0x4ef   : > { %v1884_v41 = vmul.f32 1.442695, %v1865_v28  ;;  %v1890_v10 = vmul.f32 1.442695, %v1868_v48  ;;  %v2168_v48 = vsel %vm768_vm0, %v4736_v55, 0 }
 0x4f0   : > { %v1839_v57 = vpop.xlane.xlu1 %1838  ;;  %v1841_v3 = vpop.xlane.xlu0 %1840 }
 0x4f1   : > { %v1866_v21 = vsub.f32 %v4799_v9, %v1839_v57  ;;  %v1867_v18 = vsub.f32 %v4803_v49, %v1841_v3  ;;  %3840 = vpow2.f32 %v1884_v41 }
 0x4f3   : > { %v1886_v22 = vmul.f32 1.442695, %v1866_v21  ;;  %v1888_v7 = vmul.f32 1.442695, %v1867_v18 }
 0x4f4   : > { %v1845_v15 = vpop.xlane.xlu1 %1844  ;;  %v1851_v49 = vpop.xlane.xlu0 %1850 }
 0x4f5   : > { %3842 = vpow2.f32 %v1886_v22  ;;  %v1869_v20 = vsub.f32 %v4801_v19, %v1845_v15  ;;  %v1872_v39 = vsub.f32 %v4807_v42, %v1851_v49 }
 0x4f6   : > { %v4880_v23 = vpop.eup %3834  ;;  %3844 = vpow2.f32 %v1888_v7 }
 0x4f7   : > { %v4882_v30 = vpop.eup %3836  ;;  %v1892_v34 = vmul.f32 1.442695, %v1869_v20  ;;  %3846 = vpow2.f32 %v1890_v10  ;;  %v1898_v22 = vmul.f32 1.442695, %v1872_v39 }
 0x4f8   : > { %v1847_v26 = vpop.xlane.xlu1 %1846  ;;  %v1942_v9 = vpack.c.bf16 %v4880_v23, %v4882_v30  ;;  %v4886_v3 = vpop.eup %3838 }
 0x4f9   : > { %3848 = vpow2.f32 %v1892_v34  ;;  %v1870_v46 = vsub.f32 %v4811_v56, %v1847_v26 }
 0x4fa   : > { %3558 = vmatprep.mubr.bf16.mxu0 %v1942_v9  ;;  %v2174_v9 = vsel %vm768_vm0, %v4872_v61, 0 }
 0x4fb   : > { %v4889_v33 = vpop.eup %3840  ;;  %v1894_v41 = vmul.f32 1.442695, %v1870_v46 }
 0x4fc   : > { %v1853_v19 = vpop.xlane.xlu1 %1852  ;;  %v1943_v36 = vpack.c.bf16 %v4889_v33, %v4886_v3 }
 0x4fd   : > { %v1873_v2 = vsub.f32 %v4813_v6, %v1853_v19  ;;  %3850 = vpow2.f32 %v1894_v41 }
 0x4fe   : > { %3559 = vmatmul.mubr.bf16.vlgmr.msra.gmra.mrb[48].mxu0 %v1943_v36 }
 0x4ff   : > { %v4895_v28 = vpop.eup %3842  ;;  %v1900_v56 = vmul.f32 1.442695, %v1873_v2  ;;  %3575 = vmatpush3.bf16.xpose.msra.mxu0 %v2168_v48  ;;  %v2177_v2 = vsel %vm768_vm0, %v4870_v58, 0 }
 0x500   : > { %v4899_v57 = vpop.eup %3844  ;;  %v1849_v21 = vpop.xlane.xlu1 %1848  ;;  %3695 = vmatprep.subr.msk.bf16.mxu0 %vm768_vm0, %v4866_v53 }
 0x501   : > { %v1871_v6 = vsub.f32 %v4815_v43, %v1849_v21  ;;  %v1944_v42 = vpack.c.bf16 %v4899_v57, %v4895_v28  ;;  %v4906_v18 = vpop.eup %3846  ;;  %3852 = vpow2.f32 %v1900_v56  ;;  %v2171_v43 = vsel %vm768_vm0, %v4866_v53, 0 }
 0x503   : > { %v4908_v7 = vpop.eup %3848  ;;  %v1896_v55 = vmul.f32 1.442695, %v1871_v6  ;;  %3562 = vmatprep.mubr.bf16.mxu0 %v1944_v42 }
 0x504   : > { %v1945_v10 = vpack.c.bf16 %v4908_v7, %v4906_v18  ;;  %v1859_v15 = vpop.xlane.xlu1 %1858 }
 0x505   : > { %3854 = vpow2.f32 %v1896_v55 }
 0x506   : > { %3856 = vpow2.f32 %v1898_v22  ;;  %3563 = vmatmul.mubr.bf16.gmra.mrb[52].mxu0 %v1945_v10 }
 0x507   : > { %3577 = vmatpush3.bf16.xpose.msra.mxu0 %v2171_v43  ;;  %v4916_v20 = vpop.eup %3850 }
 0x508   : > { %3696 = vmatprep.subr.msk.bf16.mxu0 %vm768_vm0, %v4872_v61  ;;  %v1861_v19 = vpop.xlane.xlu1 %1860  ;;  %v1855_v61 = vpop.xlane.xlu0 %1854 }
 0x509   : > { %v1874_v56 = vsub.f32 %v4821_v1, %v1855_v61  ;;  %v1877_v21 = vsub.f32 %v4824_v40, %v1861_v19 }
 0x50b   : > { %v4918_v34 = vpop.eup %3852  ;;  %v1902_v6 = vmul.f32 1.442695, %v1874_v56  ;;  %v1908_v42 = vmul.f32 1.442695, %v1877_v21 }
 0x50c   : > { %v2136_v36 = vpop.permute.xlu1 %2135  ;;  %v2138_v41 = vpop.permute.xlu0 %2137 }
 0x50d   : > { %v2180_v39 = vsel %vm768_vm0, %v2136_v36, 0  ;;  %v2183_v48 = vsel %vm768_vm0, %v2138_v41, 0  ;;  %3858 = vpow2.f32 %v1902_v6 }
 0x50e   : > { %3860 = vpow2.f32 %v1908_v42 }
 0x50f   : > { %v4920_v26 = vpop.eup %3854  ;;  %3579 = vmatpush3.bf16.xpose.msra.mxu0 %v2174_v9 }
 0x510   : > { %v4924_v49 = vpop.eup %3856  ;;  %v1946_v53 = vpack.c.bf16 %v4920_v26, %v4916_v20  ;;  %3697 = vmatprep.subr.msk.bf16.mxu0 %vm768_vm0, %v4870_v58  ;;  %v1876_v58 = vsub.f32 %v4818_v32, %v1859_v15  ;;  %v2114_v1 = vpop.permute.xlu1 %2113 }
 0x511   : > { %v1947_v46 = vpack.c.bf16 %v4918_v34, %v4924_v49 }
 0x512   : > { %3566 = vmatprep.mubr.bf16.mxu0 %v1946_v53  ;;  %v1906_v10 = vmul.f32 1.442695, %v1876_v58 }
 0x513   : > { %3567 = vmatmul.mubr.bf16.gmra.mrb[56].mxu0 %v1947_v46 }
 0x514   : > { %v2118_v32 = vpop.permute.xlu1 %2117 }
 0x517   : > { %3581 = vmatpush3.bf16.xpose.msra.mxu0 %v2177_v2  ;;  %v4945_v46 = vpop.eup %3858 }
 0x518   : > { %3698 = vmatprep.subr.msk.bf16.mxu0 %vm768_vm0, %v2136_v36  ;;  %v4948_v19 = vpop.eup %3860 }
 0x51f   : > { %3583 = vmatpush3.bf16.xpose.msra.mxu0 %v2180_v39 }
 0x520   : > { %3699 = vmatprep.subr.msk.bf16.mxu0 %vm768_vm0, %v2138_v41 }
 0x527   : > { %3585 = vmatpush3.bf16.xpose.msra.mxu0 %v2183_v48  ;;  %v2122_v48 = vpop.permute.xlu1 %2121 }
 0x52b   : > { %v2126_v21 = vpop.permute.xlu1 %2125 }
 0x52f   : > { %v2411_v42 = vpop.permute.xlu1 %2410 }
 0x532   : > { %v1857_v22 = vpop.xlane.xlu0 %1856 }
 0x533   : > { %v1875_v55 = vsub.f32 %v4826_v12, %v1857_v22 }
 0x535   : > { %v1904_v43 = vmul.f32 1.442695, %v1875_v55  ;;  %v2415_v55 = vpop.permute.xlu1 %2414 }
 0x536   : > { %v2140_v9 = vpop.permute.xlu0 %2139 }
 0x537   : > { %3862 = vpow2.f32 %v1904_v43  ;;  %3700 = vmatprep.subr.msk.bf16.mxu0 %vm768_vm0, %v2140_v9  ;;  %v2186_v53 = vsel %vm768_vm0, %v2140_v9, 0 }
 0x538   : > { %3864 = vpow2.f32 %v1906_v10  ;;  %3587 = vmatpush3.bf16.xpose.msra.mxu0 %v2186_v53 }
 0x539   : > { %v2419_v43 = vpop.permute.xlu1 %2418 }
 0x53a   : > { %v2142_v40 = vpop.permute.xlu0 %2141 }
 0x53b   : > { %3701 = vmatprep.subr.msk.bf16.mxu0 %vm768_vm0, %v2142_v40  ;;  %v2189_v12 = vsel %vm768_vm0, %v2142_v40, 0 }
 0x53e   : > { %v2112_v15 = vpop.permute.xlu0 %2111 }
 0x540   : > { %3589 = vmatpush3.bf16.xpose.msra.mxu0 %v2189_v12 }
 0x541   : > { %v4950_v2 = vpop.eup %3862 }
 0x542   : > { %v4952_v36 = vpop.eup %3864  ;;  %v2116_v61 = vpop.permute.xlu0 %2115  ;;  %v1948_v39 = vpack.c.bf16 %v4950_v2, %v4945_v46 }
 0x543   : > { %v1949_v41 = vpack.c.bf16 %v4948_v19, %v4952_v36 }
 0x544   : > { %3570 = vmatprep.mubr.bf16.mxu0 %v1948_v39 }
 0x545   : > { %3571 = vmatmul.mubr.bf16.gmra.mrb[60].mxu0 %v1949_v41 }
 0x546   : > { %3590 = vmatprep.mubr.msk.bf16.mxu0 %vm768_vm0, %v2112_v15  ;;  %v2120_v56 = vpop.permute.xlu0 %2119 }
 0x54a   : > { %v2124_v58 = vpop.permute.xlu0 %2123 }
 0x54d   : > { %3591 = vmatmul.mubr.msk.bf16.vlgmr.msra.gmra.mrb[64].mxu0 %vm768_vm0, %v2114_v1 }
 0x54e   : > { %3594 = vmatprep.mubr.msk.bf16.mxu0 %vm768_vm0, %v2116_v61  ;;  %v2409_v6 = vpop.permute.xlu0 %2408 }
 0x54f   : > { %3606 = vmatprep.subr.bf16.mxu1 %v2409_v6 }
 0x550   : > { %3607 = vmatpush3.bf16.msra.mxu1 %v2409_v6 }
 0x551   : > { %3608 = vmatprep.subr.bf16.mxu1 %v2411_v42 }
 0x552   : > { %v2413_v22 = vpop.permute.xlu0 %2412 }
 0x554   : > { %3609 = vmatpush3.bf16.msra.mxu1 %v2411_v42 }
 0x555   : > { %3595 = vmatmul.mubr.msk.bf16.gmra.mrb[68].mxu0 %vm768_vm0, %v2118_v32  ;;  %3610 = vmatprep.subr.bf16.mxu1 %v2413_v22 }
 0x556   : > { %3598 = vmatprep.mubr.msk.bf16.mxu0 %vm768_vm0, %v2120_v56  ;;  %v2417_v10 = vpop.permute.xlu0 %2416 }
 0x558   : > { %3611 = vmatpush3.bf16.msra.mxu1 %v2413_v22 }
 0x559   : > { %3612 = vmatprep.subr.bf16.mxu1 %v2415_v55 }
 0x55c   : > { %3613 = vmatpush3.bf16.msra.mxu1 %v2415_v55 }
 0x55d   : > { %3599 = vmatmul.mubr.msk.bf16.gmra.mrb[72].mxu0 %vm768_vm0, %v2122_v48  ;;  %3614 = vmatprep.subr.bf16.mxu1 %v2417_v10 }
 0x55e   : > { %3602 = vmatprep.mubr.msk.bf16.mxu0 %vm768_vm0, %v2124_v58 }
 0x560   : > { %3615 = vmatpush3.bf16.msra.mxu1 %v2417_v10 }
 0x561   : > { %3616 = vmatprep.subr.bf16.mxu1 %v2419_v43 }
 0x564   : > { %3617 = vmatpush3.bf16.msra.mxu1 %v2419_v43 }
 0x565   : > { %3603 = vmatmul.mubr.msk.bf16.gmra.mrb[76].mxu0 %vm768_vm0, %v2126_v21 }
 0x5d1   : > { %v4966_v9 = vpop.f32.mrb[48].mxu0 }
 0x5d2   : > { %v4968_v53 = vpop.f32.mrb[49].mxu0 }
 0x5d3   : > { %v4970_v1 = vpop.f32.mrb[50].mxu0 }
 0x5d4   : > { %v4972_v40 = vpop.f32.mrb[51].mxu0 }
 0x5d9   : > { %v4974_v32 = vpop.f32.mrb[52].mxu0 }
 0x5da   : > { %5501 = vst [vmem:[#allocation40_spill] sm:$0xff] %v4974_v32  ;;  %v4976_v15 = vpop.f32.mrb[53].mxu0 }
 0x5db   : > { %5502 = vst [vmem:[#allocation41_spill] sm:$0xff] %v4976_v15  ;;  %v4978_v12 = vpop.f32.mrb[54].mxu0 }
 0x5dc   : > { %5503 = vst [vmem:[#allocation42_spill] sm:$0xff] %v4978_v12  ;;  %v4980_v61 = vpop.f32.mrb[55].mxu0 }
 0x5dd   : > { %5504 = vst [vmem:[#allocation43_spill] sm:$0xff] %v4980_v61 }
 0x5e6   : > { %v4982_v39 = vpop.f32.mrb[56].mxu0 }
 0x5e7   : > { %5505 = vst [vmem:[#allocation44_spill] sm:$0xff] %v4982_v39  ;;  %v4984_v41 = vpop.f32.mrb[57].mxu0 }
 0x5e8   : > { %5506 = vst [vmem:[#allocation45_spill] sm:$0xff] %v4984_v41  ;;  %v4986_v48 = vpop.f32.mrb[58].mxu0 }
 0x5e9   : > { %5507 = vst [vmem:[#allocation46_spill] sm:$0xff] %v4986_v48  ;;  %v4988_v56 = vpop.f32.mrb[59].mxu0 }
 0x5ea   : > { %5508 = vst [vmem:[#allocation47_spill] sm:$0xff] %v4988_v56 }
 0x618   : > { %v4990_v21 = vpop.f32.mrb[60].mxu0 }
 0x619   : > { %5509 = vst [vmem:[#allocation48_spill] sm:$0xff] %v4990_v21  ;;  %v4992_v58 = vpop.f32.mrb[61].mxu0 }
 0x61a   : > { %5510 = vst [vmem:[#allocation49_spill] sm:$0xff] %v4992_v58  ;;  %v4994_v6 = vpop.f32.mrb[62].mxu0 }
 0x61b   : > { %5511 = vst [vmem:[#allocation50_spill] sm:$0xff] %v4994_v6  ;;  %v4996_v42 = vpop.f32.mrb[63].mxu0 }
 0x61c   : > { %5512 = vst [vmem:[#allocation51_spill] sm:$0xff] %v4996_v42 }
 0x620   : > { %v4998_v22 = vpop.f32.mrb[64].mxu0 }
 0x621   : > { %2292 = vmax.xlane.f32.xlu1 %v4998_v22  ;;  %v5001_v55 = vpop.f32.mrb[65].mxu0 }
 0x622   : > { %2288 = vmax.xlane.f32.xlu0 %v5001_v55  ;;  %v5004_v10 = vpop.f32.mrb[66].mxu0 }
 0x623   : > { %v5006_v43 = vpop.f32.mrb[67].mxu0 }
 0x625   : > { %2294 = vmax.xlane.f32.xlu1 %v5004_v10 }
 0x628   : > { %v5009_v21 = vpop.f32.mrb[68].mxu0 }
 0x629   : > { %2290 = vmax.xlane.f32.xlu1 %v5006_v43  ;;  %v5012_v6 = vpop.f32.mrb[69].mxu0 }
 0x62a   : > { %2296 = vmax.xlane.f32.xlu0 %v5012_v6  ;;  %v5015_v42 = vpop.f32.mrb[70].mxu0 }
 0x62b   : > { %v5017_v48 = vpop.f32.mrb[71].mxu0 }
 0x62d   : > { %2300 = vmax.xlane.f32.xlu1 %v5009_v21 }
 0x630   : > { %v5020_v39 = vpop.f32.mrb[72].mxu0 }
 0x631   : > { %2302 = vmax.xlane.f32.xlu1 %v5015_v42  ;;  %v5023_v58 = vpop.f32.mrb[73].mxu0 }
 0x632   : > { %v5025_v56 = vpop.f32.mrb[74].mxu0 }
 0x633   : > { %v5027_v41 = vpop.f32.mrb[75].mxu0 }
 0x635   : > { %2298 = vmax.xlane.f32.xlu1 %v5017_v48 }
 0x638   : > { %v5030_v12 = vpop.f32.mrb[76].mxu0 }
 0x639   : > { %2308 = vmax.xlane.f32.xlu1 %v5020_v39  ;;  %v5033_v32 = vpop.f32.mrb[77].mxu0 }
 0x63a   : > { %v5035_v61 = vpop.f32.mrb[78].mxu0 }
 0x63b   : > { %v5037_v15 = vpop.f32.mrb[79].mxu0 }
 0x63d   : > { %2306 = vmax.xlane.f32.xlu1 %v5027_v41 }
 0x640   : > { %2420 = vrot.lane.b32.xlu0 %v4278_v50, %s4037_s6 }
 0x641   : > { %2316 = vmax.xlane.f32.xlu1 %v5030_v12 }
 0x645   : > { %2312 = vmax.xlane.f32.xlu1 %v5033_v32 }
 0x656   : > { %2422 = vrot.lane.b32.xlu1 %v4292_v60, %s4037_s6 }
 0x65f   : > { %2304 = vmax.xlane.f32.xlu0 %v5023_v58 }
 0x663   : > { %2310 = vmax.xlane.f32.xlu0 %v5025_v56 }
 0x667   : > { %2314 = vmax.xlane.f32.xlu0 %v5037_v15 }
 0x66b   : > { %2318 = vmax.xlane.f32.xlu0 %v5035_v61 }
 0x66f   : > { %1446 = vadd.xlane.f32.xlu0 %v4640_v59 }
 0x673   : > { %1448 = vadd.xlane.f32.xlu0 %v4642_v62 }
 0x677   : > { %1450 = vadd.xlane.f32.xlu0 %v4636_v5 }
 0x67a   : > { %1444 = vadd.xlane.f32.xlu1 %v4638_v13 }
 0x67b   : > { %1910 = vadd.xlane.f32.xlu0 %v4882_v30 }
 0x67e   : > { %1452 = vadd.xlane.f32.xlu1 %v4655_v17 }
 0x67f   : > { %1912 = vadd.xlane.f32.xlu0 %v4880_v23 }
 0x682   : > { %1456 = vadd.xlane.f32.xlu1 %v4662_v44 }
 0x683   : > { %1914 = vadd.xlane.f32.xlu0 %v4886_v3 }
 0x686   : > { %1918 = vadd.xlane.f32.xlu1 %v4895_v28 }
 0x687   : > { %1916 = vadd.xlane.f32.xlu0 %v4889_v33 }
 0x68a   : > { %1922 = vadd.xlane.f32.xlu1 %v4906_v18 }
 0x68b   : > { %1454 = vadd.xlane.f32.xlu0 %v4652_v27 }
 0x68e   : > { %1460 = vadd.xlane.f32.xlu1 %v4672_v37 }
 0x68f   : > { %1458 = vadd.xlane.f32.xlu0 %v4664_v47 }
 0x692   : > { %1464 = vadd.xlane.f32.xlu1 %v4682_v54 }
 0x693   : > { %1920 = vadd.xlane.f32.xlu0 %v4899_v57 }
 0x696   : > { %1926 = vadd.xlane.f32.xlu1 %v4916_v20 }
 0x697   : > { %1924 = vadd.xlane.f32.xlu0 %v4908_v7 }
 0x69a   : > { %1930 = vadd.xlane.f32.xlu1 %v4924_v49 }
 0x69b   : > { %1462 = vadd.xlane.f32.xlu0 %v4678_v11 }
 0x69e   : > { %1468 = vadd.xlane.f32.xlu1 %v4701_v14 }
 0x69f   : > { %1466 = vadd.xlane.f32.xlu0 %v4676_v0 }
 0x6a2   : > { %1472 = vadd.xlane.f32.xlu1 %v4708_v51 }
 0x6a3   : > { %1928 = vadd.xlane.f32.xlu0 %v4920_v26 }
 0x6a6   : > { %1934 = vadd.xlane.f32.xlu1 %v4945_v46 }
 0x6a7   : > { %1932 = vadd.xlane.f32.xlu0 %v4918_v34 }
 0x6aa   : > { %1938 = vadd.xlane.f32.xlu1 %v4952_v36 }
 0x6ab   : > { %1470 = vadd.xlane.f32.xlu0 %v4706_v52 }
 0x6ae   : > { %v2293_v50 = vpop.xlane.xlu1 %2292  ;;  %994 = vadd.xlane.f32.xlu1 %v4508_v4 }
 0x6af   : > { %v2322_v60 = vsub.f32 %v4998_v22, %v2293_v50  ;;  %1474 = vadd.xlane.f32.xlu0 %v4704_v16  ;;  %v2289_v5 = vpop.xlane.xlu0 %2288 }
 0x6b0   : > { %v2320_v59 = vsub.f32 %v5001_v55, %v2289_v5 }
 0x6b1   : > { %v2340_v13 = vmul.f32 1.442695, %v2322_v60 }
 0x6b2   : > { %v2295_v62 = vpop.xlane.xlu1 %2294  ;;  %998 = vadd.xlane.f32.xlu1 %v4516_v24  ;;  %v2336_v44 = vmul.f32 1.442695, %v2320_v59 }
 0x6b3   : > { %v2323_v27 = vsub.f32 %v5004_v10, %v2295_v62  ;;  %1936 = vadd.xlane.f32.xlu0 %v4950_v2  ;;  %3866 = vpow2.f32 %v2340_v13 }
 0x6b5   : > { %v2342_v17 = vmul.f32 1.442695, %v2323_v27 }
 0x6b6   : > { %v2291_v47 = vpop.xlane.xlu1 %2290  ;;  %1002 = vadd.xlane.f32.xlu1 %v4529_v25 }
 0x6b7   : > { %3868 = vpow2.f32 %v2342_v17  ;;  %v2321_v4 = vsub.f32 %v5006_v43, %v2291_v47  ;;  %1940 = vadd.xlane.f32.xlu0 %v4948_v19  ;;  %v2297_v37 = vpop.xlane.xlu0 %2296 }
 0x6b8   : > { %3870 = vpow2.f32 %v2336_v44  ;;  %v2324_v24 = vsub.f32 %v5012_v6, %v2297_v37 }
 0x6b9   : > { %v2338_v0 = vmul.f32 1.442695, %v2321_v4 }
 0x6ba   : > { %v2301_v11 = vpop.xlane.xlu1 %2300  ;;  %1006 = vadd.xlane.f32.xlu1 %v4544_v45  ;;  %v2344_v16 = vmul.f32 1.442695, %v2324_v24 }
 0x6bb   : > { %3872 = vpow2.f32 %v2338_v0  ;;  %v2326_v54 = vsub.f32 %v5009_v21, %v2301_v11  ;;  %996 = vadd.xlane.f32.xlu0 %v4506_v38  ;;  %v2421_v14 = vpop.permute.xlu0 %2420 }
 0x6bc   : > { %3618 = vmatprep.subr.bf16.mxu1 %v2421_v14 }
 0x6bd   : > { %v2348_v25 = vmul.f32 1.442695, %v2326_v54  ;;  %3619 = vmatpush3.bf16.msra.mxu1 %v2421_v14  ;;  %v3867_v23 = vpop.eup %3866 }
 0x6be   : > { %v2303_v52 = vpop.xlane.xlu1 %2302  ;;  %1010 = vadd.xlane.f32.xlu1 %v4552_v63 }
 0x6bf   : > { %3874 = vpow2.f32 %v2348_v25  ;;  %v2327_v51 = vsub.f32 %v5015_v42, %v2303_v52  ;;  %1000 = vadd.xlane.f32.xlu0 %v4518_v29 }
 0x6c0   : > { %3876 = vpow2.f32 %v2344_v16 }
 0x6c1   : > { %v3869_v45 = vpop.eup %3868  ;;  %v2350_v30 = vmul.f32 1.442695, %v2327_v51 }
 0x6c2   : > { %v2299_v3 = vpop.xlane.xlu1 %2298  ;;  %2372 = vadd.xlane.f32.xlu1 %v3867_v23  ;;  %v2401_v38 = vpack.c.bf16 %v3869_v45, %v3867_v23  ;;  %v3871_v28 = vpop.eup %3870  ;;  %v5513_v23 = vld [vmem:[#allocation21_spill] sm:$0xff] }
 0x6c3   : > { %3878 = vpow2.f32 %v2350_v30  ;;  %v2325_v33 = vsub.f32 %v5017_v48, %v2299_v3  ;;  %1004 = vadd.xlane.f32.xlu0 %v4536_v31 }
 0x6c5   : > { %v3873_v57 = vpop.eup %3872  ;;  %v2346_v63 = vmul.f32 1.442695, %v2325_v33 }
 0x6c6   : > { %v2309_v18 = vpop.xlane.xlu1 %2308  ;;  %2368 = vadd.xlane.f32.xlu1 %v3871_v28  ;;  %v2400_v7 = vpack.c.bf16 %v3873_v57, %v3871_v28  ;;  %v5514_v28 = vld [vmem:[#allocation24_spill] sm:$0xff] }
 0x6c7   : > { %3880 = vpow2.f32 %v2346_v63  ;;  %v2330_v29 = vsub.f32 %v5020_v39, %v2309_v18  ;;  %1008 = vadd.xlane.f32.xlu0 %v4532_v8  ;;  %v5516_v63 = vld [vmem:[#allocation18_spill] sm:$0xff] }
 0x6c8   : > { %3622 = vmatprep.mubr.bf16.mxu1 %v2400_v7  ;;  %v5517_v7 = vld [vmem:[#allocation26_spill] sm:$0xff] }
 0x6c9   : > { %v3875_v20 = vpop.eup %3874  ;;  %v2356_v34 = vmul.f32 1.442695, %v2330_v29 }
 0x6ca   : > { %v2307_v26 = vpop.xlane.xlu1 %2306  ;;  %2380 = vadd.xlane.f32.xlu1 %v3875_v20  ;;  %v3877_v49 = vpop.eup %3876 }
 0x6cb   : > { %3882 = vpow2.f32 %v2356_v34  ;;  %2374 = vadd.xlane.f32.xlu0 %v3869_v45  ;;  %v2329_v8 = vsub.f32 %v5027_v41, %v2307_v26 }
 0x6cd   : > { %v3879_v31 = vpop.eup %3878  ;;  %v2354_v6 = vmul.f32 1.442695, %v2329_v8 }
 0x6ce   : > { %v2317_v46 = vpop.xlane.xlu1 %2316  ;;  %2376 = vadd.xlane.f32.xlu1 %v3877_v49  ;;  %v2403_v19 = vpack.c.bf16 %v3879_v31, %v3875_v20 }
 0x6cf   : > { %2370 = vadd.xlane.f32.xlu0 %v3873_v57  ;;  %v2334_v42 = vsub.f32 %v5030_v12, %v2317_v46  ;;  %3884 = vpow2.f32 %v2354_v6  ;;  %v5515_v57 = vld [vmem:[#allocation19_spill] sm:$0xff]  ;;  %v5521_v6 = vld [vmem:[#allocation22_spill] sm:$0xff] }
 0x6d0   : > { %v5519_v46 = vld [vmem:[#allocation27_spill] sm:$0xff] }
 0x6d1   : > { %v3881_v2 = vpop.eup %3880  ;;  %v2364_v43 = vmul.f32 1.442695, %v2334_v42 }
 0x6d2   : > { %v2313_v36 = vpop.xlane.xlu1 %2312  ;;  %v2402_v48 = vpack.c.bf16 %v3881_v2, %v3877_v49  ;;  %v5518_v49 = vld [vmem:[#allocation25_spill] sm:$0xff] }
 0x6d3   : > { %2382 = vadd.xlane.f32.xlu0 %v3879_v31  ;;  %v2332_v50 = vsub.f32 %v5033_v32, %v2313_v36 }
 0x6d5   : > { %v3883_v39 = vpop.eup %3882  ;;  %v2360_v59 = vmul.f32 1.442695, %v2332_v50  ;;  %v5522_v50 = vld [vmem:[#allocation23_spill] sm:$0xff] }
 0x6d6   : > { %v2423_v21 = vpop.permute.xlu1 %2422  ;;  %2388 = vadd.xlane.f32.xlu1 %v3883_v39 }
 0x6d7   : > { %2378 = vadd.xlane.f32.xlu0 %v3881_v2  ;;  %3620 = vmatprep.subr.bf16.mxu1 %v2423_v21  ;;  %v5520_v2 = vld [vmem:[#allocation20_spill] sm:$0xff] }
 0x6d8   : > { %3621 = vmatpush3.bf16.msra.mxu1 %v2423_v21 }
 0x6d9   : > { %v3885_v17 = vpop.eup %3884 }
 0x6db   : > { %3623 = vmatmul.mubr.bf16.vlgmr.msra.gmra.mrb[80].mxu1 %v2401_v38 }
 0x6dc   : > { %3626 = vmatprep.mubr.bf16.mxu1 %v2402_v48 }
 0x6e3   : > { %3627 = vmatmul.mubr.bf16.gmra.mrb[84].mxu1 %v2403_v19 }
 0x6ec   : > { %v2305_v22 = vpop.xlane.xlu0 %2304 }
 0x6ed   : > { %v2328_v55 = vsub.f32 %v5023_v58, %v2305_v22 }
 0x6ef   : > { %v2352_v10 = vmul.f32 1.442695, %v2328_v55 }
 0x6f0   : > { %v2311_v60 = vpop.xlane.xlu0 %2310 }
 0x6f1   : > { %3886 = vpow2.f32 %v2352_v10  ;;  %v2331_v5 = vsub.f32 %v5025_v56, %v2311_v60 }
 0x6f2   : > { %3888 = vpow2.f32 %v2364_v43 }
 0x6f3   : > { %v2358_v13 = vmul.f32 1.442695, %v2331_v5 }
 0x6f4   : > { %v2315_v62 = vpop.xlane.xlu0 %2314 }
 0x6f5   : > { %3890 = vpow2.f32 %v2358_v13  ;;  %v2333_v41 = vsub.f32 %v5037_v15, %v2315_v62 }
 0x6f6   : > { %3892 = vpow2.f32 %v2360_v59 }
 0x6f7   : > { %v2362_v12 = vmul.f32 1.442695, %v2333_v41 }
 0x6f8   : > { %v2319_v27 = vpop.xlane.xlu0 %2318 }
 0x6f9   : > { %3894 = vpow2.f32 %v2362_v12  ;;  %v2335_v58 = vsub.f32 %v5035_v61, %v2319_v27 }
 0x6fb   : > { %v3887_v44 = vpop.eup %3886  ;;  %v2366_v32 = vmul.f32 1.442695, %v2335_v58 }
 0x6fc   : > { %2384 = vadd.xlane.f32.xlu1 %v3887_v44  ;;  %v1447_v47 = vpop.xlane.xlu0 %1446  ;;  %v2404_v4 = vpack.c.bf16 %v3885_v17, %v3887_v44  ;;  %v3889_v56 = vpop.eup %3888  ;;  %v5523_v44 = vld [vmem:[#allocation29_spill] sm:$0xff] }
 0x6fd   : > { %3896 = vpow2.f32 %v2366_v32 }
 0x6fe   : > { %3630 = vmatprep.mubr.bf16.mxu1 %v2404_v4 }
 0x6ff   : > { %v3891_v37 = vpop.eup %3890 }
 0x700   : > { %2396 = vadd.xlane.f32.xlu1 %v3889_v56  ;;  %2390 = vadd.xlane.f32.xlu0 %v3891_v37  ;;  %v1449_v0 = vpop.xlane.xlu0 %1448  ;;  %v2405_v15 = vpack.c.bf16 %v3891_v37, %v3883_v39  ;;  %v3893_v24 = vpop.eup %3892 }
 0x701   : > { %3898 = vrcp.f32 %v1449_v0 }
 0x702   : > { %3631 = vmatmul.mubr.bf16.gmra.mrb[88].mxu1 %v2405_v15  ;;  %v5525_v15 = vld [vmem:[#allocation28_spill] sm:$0xff] }
 0x703   : > { %v3895_v11 = vpop.eup %3894 }
 0x704   : > { %2392 = vadd.xlane.f32.xlu1 %v3893_v24  ;;  %2386 = vadd.xlane.f32.xlu0 %v3885_v17  ;;  %v1451_v61 = vpop.xlane.xlu0 %1450  ;;  %v2406_v54 = vpack.c.bf16 %v3895_v11, %v3893_v24 }
 0x705   : > { %3900 = vrcp.f32 %v1451_v61 }
 0x706   : > { %3902 = vrcp.f32 %v1447_v47  ;;  %3634 = vmatprep.mubr.bf16.mxu1 %v2406_v54  ;;  %v5524_v47 = vld [vmem:[#allocation31_spill] sm:$0xff] }
 0x707   : > { %v3897_v14 = vpop.eup %3896  ;;  %v1445_v25 = vpop.xlane.xlu1 %1444 }
 0x708   : > { %3904 = vrcp.f32 %v1445_v25  ;;  %1014 = vadd.xlane.f32.xlu1 %v4564_v35  ;;  %2398 = vadd.xlane.f32.xlu0 %v3897_v14  ;;  %v1911_v16 = vpop.xlane.xlu0 %1910  ;;  %v2407_v52 = vpack.c.bf16 %v3897_v14, %v3889_v56 }
 0x709   : > { %3906 = vrcp.f32 %v1911_v16 }
 0x70a   : > { %3635 = vmatmul.mubr.bf16.gmra.mrb[92].mxu1 %v2407_v52 }
 0x70b   : > { %v1453_v51 = vpop.xlane.xlu1 %1452  ;;  %v3899_v30 = vpop.eup %3898 }
 0x70c   : > { %1018 = vadd.xlane.f32.xlu1 %v5513_v23  ;;  %2394 = vadd.xlane.f32.xlu0 %v3895_v11  ;;  %v1913_v45 = vpop.xlane.xlu0 %1912  ;;  %v5112_v18 = vmul.f32 %v3899_v30, %v5516_v63  ;;  %v5526_v11 = vld [vmem:[#allocation30_spill] sm:$0xff] }
 0x70d   : > { %3908 = vrcp.f32 %v1913_v45  ;;  %v5528_v45 = vld [vmem:[#allocation43_spill] sm:$0xff] }
 0x70f   : > { %v3901_v3 = vpop.eup %3900  ;;  %v1457_v38 = vpop.xlane.xlu1 %1456 }
 0x710   : > { %v3903_v33 = vpop.eup %3902  ;;  %1022 = vadd.xlane.f32.xlu1 %v5514_v28  ;;  %1012 = vadd.xlane.f32.xlu0 %v5515_v57  ;;  %v1915_v35 = vpop.xlane.xlu0 %1914  ;;  %v5115_v29 = vmul.f32 %v3901_v3, %v5517_v7  ;;  %v5530_v7 = vld [vmem:[#allocation42_spill] sm:$0xff] }
 0x711   : > { %3910 = vrcp.f32 %v1915_v35  ;;  %v1630_v19 = vmul.f32 %v3903_v33, %v5519_v46  ;;  %v5529_v35 = vld [vmem:[#allocation40_spill] sm:$0xff] }
 0x712   : > { %v3905_v20 = vpop.eup %3904  ;;  %v1646_v34 = vpack.c.bf16 %v5115_v29, %v5112_v18 }
 0x713   : > { %v1919_v26 = vpop.xlane.xlu1 %1918  ;;  %v1629_v31 = vmul.f32 %v3905_v20, %v5518_v49  ;;  %v3907_v48 = vpop.eup %3906 }
 0x714   : > { %1016 = vadd.xlane.f32.xlu0 %v5520_v2  ;;  %v1917_v36 = vpop.xlane.xlu0 %1916  ;;  %v2087_v22 = vmul.f32 %v3907_v48, %v4968_v53  ;;  %v5531_v2 = vld [vmem:[#allocation33_spill] sm:$0xff]  ;;  %v5532_v48 = vld [vmem:[#allocation35_spill] sm:$0xff] }
 0x715   : > { %3912 = vrcp.f32 %v1917_v36  ;;  %v1645_v39 = vpack.c.bf16 %v1630_v19, %v1629_v31 }
 0x716   : > { %3914 = vrcp.f32 %v1453_v51  ;;  %v5527_v51 = vld [vmem:[#allocation41_spill] sm:$0xff] }
 0x717   : > { %v3909_v21 = vpop.eup %3908  ;;  %v1923_v8 = vpop.xlane.xlu1 %1922 }
 0x718   : > { %1020 = vadd.xlane.f32.xlu0 %v5521_v6  ;;  %v1455_v42 = vpop.xlane.xlu0 %1454  ;;  %v2088_v55 = vmul.f32 %v3909_v21, %v4972_v40 }
 0x719   : > { %3916 = vrcp.f32 %v1455_v42 }
 0x71a   : > { %v2103_v10 = vpack.c.bf16 %v2088_v55, %v2087_v22  ;;  %3918 = vrcp.f32 %v1457_v38  ;;  %v5534_v22 = vld [vmem:[#allocation34_spill] sm:$0xff] }
 0x71b   : > { %v1461_v43 = vpop.xlane.xlu1 %1460  ;;  %v3911_v5 = vpop.eup %3910 }
 0x71c   : > { %1024 = vadd.xlane.f32.xlu0 %v5522_v50  ;;  %v1459_v60 = vpop.xlane.xlu0 %1458  ;;  %v2089_v41 = vmul.f32 %v3911_v5, %v4966_v9 }
 0x71d   : > { %3920 = vrcp.f32 %v1459_v60 }
 0x71e   : > { %3922 = vrcp.f32 %v1919_v26 }
 0x71f   : > { %v3913_v13 = vpop.eup %3912  ;;  %v1465_v59 = vpop.xlane.xlu1 %1464 }
 0x720   : > { %v1921_v62 = vpop.xlane.xlu0 %1920  ;;  %v2090_v12 = vmul.f32 %v3913_v13, %v4970_v1  ;;  %v3915_v53 = vpop.eup %3914  ;;  %v5535_v13 = vld [vmem:[#allocation45_spill] sm:$0xff] }
 0x721   : > { %3924 = vrcp.f32 %v1921_v62  ;;  %2577 = vrot.lane.b32.xlu1 %v1645_v39, %s4037_s6  ;;  %v1633_v32 = vmul.f32 %v3915_v53, %v5523_v44  ;;  %v5536_v62 = vld [vmem:[#allocation47_spill] sm:$0xff] }
 0x722   : > { %v2104_v40 = vpack.c.bf16 %v2090_v12, %v2089_v41  ;;  %3926 = vrcp.f32 %v1923_v8 }
 0x723   : > { %v3917_v27 = vpop.eup %3916  ;;  %v1927_v58 = vpop.xlane.xlu1 %1926 }
 0x724   : > { %v1925_v17 = vpop.xlane.xlu0 %1924  ;;  %v1634_v4 = vmul.f32 %v3917_v27, %v5524_v47  ;;  %v3919_v56 = vpop.eup %3918  ;;  %v5538_v47 = vld [vmem:[#allocation44_spill] sm:$0xff] }
 0x725   : > { %3928 = vrcp.f32 %v1925_v17  ;;  %2601 = vrot.lane.b32.xlu1 %v2103_v10, %s4036_s12  ;;  %v1635_v24 = vmul.f32 %v3919_v56, %v5525_v15  ;;  %v5537_v17 = vld [vmem:[#allocation49_spill] sm:$0xff]  ;;  %v5539_v56 = vld [vmem:[#allocation46_spill] sm:$0xff] }
 0x726   : > { %v1647_v9 = vpack.c.bf16 %v1634_v4, %v1633_v32  ;;  %3930 = vrcp.f32 %v1461_v43 }
 0x727   : > { %v3921_v37 = vpop.eup %3920  ;;  %v1931_v1 = vpop.xlane.xlu1 %1930 }
 0x728   : > { %v1463_v0 = vpop.xlane.xlu0 %1462  ;;  %v1636_v61 = vmul.f32 %v3921_v37, %v5526_v11  ;;  %v3923_v54 = vpop.eup %3922  ;;  %v5540_v11 = vld [vmem:[#allocation48_spill] sm:$0xff] }
 0x729   : > { %3932 = vrcp.f32 %v1463_v0  ;;  %2603 = vrot.lane.b32.xlu1 %v2104_v40, %s4036_s12  ;;  %v2091_v23 = vmul.f32 %v3923_v54, %v5527_v51 }
 0x72a   : > { %v1648_v14 = vpack.c.bf16 %v1636_v61, %v1635_v24  ;;  %3934 = vrcp.f32 %v1465_v59 }
 0x72b   : > { %v3925_v25 = vpop.eup %3924  ;;  %v1469_v16 = vpop.xlane.xlu1 %1468 }
 0x72c   : > { %v1467_v52 = vpop.xlane.xlu0 %1466  ;;  %v2092_v30 = vmul.f32 %v3925_v25, %v5528_v45  ;;  %v3927_v3 = vpop.eup %3926 }
 0x72d   : > { %3936 = vrcp.f32 %v1467_v52  ;;  %2583 = vrot.lane.b32.xlu1 %v1648_v14, %s4037_s6  ;;  %v2093_v63 = vmul.f32 %v3927_v3, %v5529_v35  ;;  %v5541_v14 = vld [vmem:[#allocation37_spill] sm:$0xff] }
 0x72e   : > { %v2105_v38 = vpack.c.bf16 %v2092_v30, %v2091_v23  ;;  %3938 = vrcp.f32 %v1927_v58 }
 0x72f   : > { %v3929_v33 = vpop.eup %3928  ;;  %v1473_v28 = vpop.xlane.xlu1 %1472 }
 0x730   : > { %v1929_v57 = vpop.xlane.xlu0 %1928  ;;  %v2094_v20 = vmul.f32 %v3929_v33, %v5530_v7  ;;  %v3931_v26 = vpop.eup %3930 }
 0x731   : > { %3940 = vrcp.f32 %v1929_v57  ;;  %v1637_v36 = vmul.f32 %v3931_v26, %v5531_v2  ;;  %v5544_v57 = vld [vmem:[#allocation36_spill] sm:$0xff] }
 0x732   : > { %2579 = vrot.lane.b32.xlu0 %v1646_v34, %s4037_s6  ;;  %v2106_v49 = vpack.c.bf16 %v2094_v20, %v2093_v63  ;;  %3942 = vrcp.f32 %v1931_v1  ;;  %v5533_v34 = vld [vmem:[#allocation32_spill] sm:$0xff]  ;;  %v5545_v63 = vld [vmem:[#allocation38_spill] sm:$0xff] }
 0x733   : > { %v3933_v31 = vpop.eup %3932  ;;  %v1935_v46 = vpop.xlane.xlu1 %1934 }
 0x734   : > { %3944 = vrcp.f32 %v1935_v46  ;;  %2607 = vrot.lane.b32.xlu1 %v2106_v49, %s4036_s12  ;;  %v1933_v19 = vpop.xlane.xlu0 %1932  ;;  %v1638_v39 = vmul.f32 %v3933_v31, %v5532_v48  ;;  %v3935_v21 = vpop.eup %3934  ;;  %v5546_v46 = vld [vmem:[#allocation5_spill] sm:$0xff] }
 0x735   : > { %3946 = vrcp.f32 %v1933_v19  ;;  %v1639_v42 = vmul.f32 %v3935_v21, %v5533_v34  ;;  %v5549_v34 = vld [vmem:[#allocation50_spill] sm:$0xff] }
 0x736   : > { %2581 = vrot.lane.b32.xlu0 %v1647_v9, %s4037_s6  ;;  %v1649_v8 = vpack.c.bf16 %v1638_v39, %v1637_v36  ;;  %3948 = vrcp.f32 %v1469_v16  ;;  %v5542_v16 = vld [vmem:[#allocation39_spill] sm:$0xff] }
 0x737   : > { %v3937_v6 = vpop.eup %3936  ;;  %v1939_v18 = vpop.xlane.xlu1 %1938  ;;  %v5547_v36 = vld [vmem:[#allocation51_spill] sm:$0xff] }
 0x738   : > { %3950 = vrcp.f32 %v1939_v18  ;;  %v1471_v29 = vpop.xlane.xlu0 %1470  ;;  %v1640_v55 = vmul.f32 %v3937_v6, %v5534_v22  ;;  %v3939_v10 = vpop.eup %3938  ;;  %v5548_v6 = vld [vmem:[#allocation7_spill] sm:$0xff] }
 0x739   : > { %3952 = vrcp.f32 %v1471_v29  ;;  %v5153_v59 = vmul.f32 %v3939_v10, %v5535_v13 }
 0x73a   : > { %2605 = vrot.lane.b32.xlu0 %v2105_v38, %s4036_s12  ;;  %v1650_v43 = vpack.c.bf16 %v1640_v55, %v1639_v42  ;;  %3954 = vrcp.f32 %v1473_v28  ;;  %v5543_v38 = vld [vmem:[#allocation2_spill] sm:$0xff] }
 0x73b   : > { %v3941_v50 = vpop.eup %3940  ;;  %v995_v60 = vpop.xlane.xlu1 %994 }
 0x73c   : > { %3956 = vrcp.f32 %v995_v60  ;;  %2587 = vrot.lane.b32.xlu1 %v1650_v43, %s4037_s6  ;;  %v1475_v5 = vpop.xlane.xlu0 %1474  ;;  %v5156_v41 = vmul.f32 %v3941_v50, %v5536_v62  ;;  %v3943_v12 = vpop.eup %3942  ;;  %v5550_v43 = vld [vmem:[#allocation6_spill] sm:$0xff] }
 0x73d   : > { %3958 = vrcp.f32 %v1475_v5  ;;  %v5165_v4 = vmul.f32 %v3943_v12, %v5538_v47  ;;  %v5551_v5 = vld [vmem:[#allocation4_spill] sm:$0xff] }
 0x73e   : > { %v3945_v53 = vpop.eup %3944  ;;  %2585 = vrot.lane.b32.xlu0 %v1649_v8, %s4037_s6  ;;  %v2107_v40 = vpack.c.bf16 %v5156_v41, %v5153_v59 }
 0x73f   : > { %v3947_v27 = vpop.eup %3946  ;;  %v999_v58 = vpop.xlane.xlu1 %998  ;;  %v5162_v44 = vmul.f32 %v3945_v53, %v5537_v17  ;;  %v5553_v17 = vld [vmem:[#allocation3_spill] sm:$0xff] }
 0x740   : > { %3960 = vrcp.f32 %v999_v58  ;;  %v1937_v32 = vpop.xlane.xlu0 %1936  ;;  %v5168_v9 = vmul.f32 %v3947_v27, %v5539_v56  ;;  %v3949_v37 = vpop.eup %3948  ;;  %v5552_v27 = vld [vmem:[#allocation13_spill] sm:$0xff] }
 0x741   : > { %3962 = vrcp.f32 %v1937_v32  ;;  %v5176_v25 = vmul.f32 %v3949_v37, %v5541_v14  ;;  %v5554_v37 = vld [vmem:[#allocation8_spill] sm:$0xff] }
 0x742   : > { %v3951_v1 = vpop.eup %3950  ;;  %v2108_v0 = vpack.c.bf16 %v5168_v9, %v5165_v4 }
 0x743   : > { %v3953_v15 = vpop.eup %3952  ;;  %v1003_v24 = vpop.xlane.xlu1 %1002  ;;  %v5173_v61 = vmul.f32 %v3951_v1, %v5540_v11  ;;  %v5555_v11 = vld [vmem:[#allocation10_spill] sm:$0xff] }
 0x744   : > { %3964 = vrcp.f32 %v1003_v24  ;;  %v1941_v54 = vpop.xlane.xlu0 %1940  ;;  %v5179_v52 = vmul.f32 %v3953_v15, %v5542_v16  ;;  %v3955_v51 = vpop.eup %3954  ;;  %v3762_v16 = vld [vmem:[%s5404_s4] sm:$0xff]  }
 0x745   : > { %3966 = vrcp.f32 %v1941_v54  ;;  %v5187_v35 = vmul.f32 %v3955_v51, %v5544_v57  ;;  %v3763_v51 = vld [vmem:[%s5404_s4 + $0x8] sm:$0xff]   ;;  %3638 = vmatprep.subr.bf16.mxu1 %v3762_v16 }
 0x746   : > { %v3957_v23 = vpop.eup %3956  ;;  %v1651_v45 = vpack.c.bf16 %v5179_v52, %v5176_v25  ;;  %3639 = vmatpush3.bf16.msra.mxu1 %v3762_v16  ;;  %v3767_v57 = vld [vmem:[%s5404_s4 + $0x28] sm:$0xff]  }
 0x747   : > { %v3959_v30 = vpop.eup %3958  ;;  %v1007_v3 = vpop.xlane.xlu1 %1006  ;;  %v5184_v33 = vmul.f32 %v3957_v23, %v5543_v38  ;;  %3640 = vmatprep.subr.bf16.mxu1 %v3763_v51  ;;  %v3764_v23 = vld [vmem:[%s5404_s4 + $0x10] sm:$0xff]   ;;  %v3766_v38 = vld [vmem:[%s5404_s4 + $0x20] sm:$0xff]   ;;  %v5556_v16 = vld [vmem:[#allocation11_spill] sm:$0xff] }
 0x748   : > { %3968 = vrcp.f32 %v1007_v3  ;;  %v997_v28 = vpop.xlane.xlu0 %996  ;;  %v5190_v7 = vmul.f32 %v3959_v30, %v5545_v63  ;;  %v3765_v30 = vld [vmem:[%s5404_s4 + $0x18] sm:$0xff]  }
 0x749   : > { %3970 = vrcp.f32 %v997_v28 }
 0x74a   : > { %v3961_v20 = vpop.eup %3960  ;;  %v1652_v26 = vpack.c.bf16 %v5190_v7, %v5187_v35  ;;  %3641 = vmatpush3.bf16.msra.mxu1 %v3763_v51 }
 0x74b   : > { %v3963_v49 = vpop.eup %3962  ;;  %v1011_v31 = vpop.xlane.xlu1 %1010  ;;  %v5195_v19 = vmul.f32 %v3961_v20, %v5546_v46  ;;  %3642 = vmatprep.subr.bf16.mxu1 %v3764_v23  ;;  %v3768_v20 = vld [vmem:[%s5404_s4 + $0x30] sm:$0xff]   ;;  %v3769_v46 = vld [vmem:[%s5404_s4 + $0x38] sm:$0xff]  }
 0x74c   : > { %3972 = vrcp.f32 %v1011_v31  ;;  %v1001_v2 = vpop.xlane.xlu0 %1000  ;;  %v5198_v48 = vmul.f32 %v3963_v49, %v5547_v36 }
 0x74d   : > { %3974 = vrcp.f32 %v1001_v2 }
 0x74e   : > { %v3965_v39 = vpop.eup %3964  ;;  %v2109_v21 = vpack.c.bf16 %v5198_v48, %v5162_v44  ;;  %3643 = vmatpush3.bf16.msra.mxu1 %v3764_v23 }
 0x74f   : > { %v3967_v8 = vpop.eup %3966  ;;  %v5203_v18 = vmul.f32 %v3965_v39, %v5548_v6  ;;  %v2373_v3 = vpop.xlane.xlu1 %2372  ;;  %3644 = vmatprep.subr.bf16.mxu1 %v3765_v30 }
 0x750   : > { %v1005_v29 = vpop.xlane.xlu0 %1004  ;;  %v5206_v42 = vmul.f32 %v3967_v8, %v5549_v34 }
 0x751   : > { %3976 = vrcp.f32 %v1005_v29 }
 0x752   : > { %v3969_v22 = vpop.eup %3968  ;;  %v2110_v55 = vpack.c.bf16 %v5206_v42, %v5173_v61  ;;  %3645 = vmatpush3.bf16.msra.mxu1 %v3765_v30 }
 0x753   : > { %v3971_v10 = vpop.eup %3970  ;;  %v5211_v50 = vmul.f32 %v3969_v22, %v5550_v43  ;;  %v2369_v28 = vpop.xlane.xlu1 %2368  ;;  %3646 = vmatprep.subr.bf16.mxu1 %v3766_v38 }
 0x754   : > { %v1009_v60 = vpop.xlane.xlu0 %1008  ;;  %v5214_v13 = vmul.f32 %v3971_v10, %v5551_v5 }
 0x755   : > { %3978 = vrcp.f32 %v1009_v60 }
 0x756   : > { %v3973_v62 = vpop.eup %3972  ;;  %v1163_v12 = vpack.c.bf16 %v5214_v13, %v5184_v33  ;;  %3647 = vmatpush3.bf16.msra.mxu1 %v3766_v38 }
 0x757   : > { %v3975_v53 = vpop.eup %3974  ;;  %v5219_v58 = vmul.f32 %v3973_v62, %v5552_v27  ;;  %3648 = vmatprep.subr.bf16.mxu1 %v3767_v57  ;;  %v2381_v49 = vpop.xlane.xlu1 %2380 }
 0x758   : > { %v5222_v32 = vmul.f32 %v3975_v53, %v5553_v17  ;;  %v2375_v63 = vpop.xlane.xlu0 %2374 }
 0x75a   : > { %v1164_v47 = vpack.c.bf16 %v5222_v32, %v5195_v19  ;;  %3649 = vmatpush3.bf16.msra.mxu1 %v3767_v57 }
 0x75b   : > { %v3977_v56 = vpop.eup %3976  ;;  %3650 = vmatprep.subr.bf16.mxu1 %v3768_v20  ;;  %v2377_v2 = vpop.xlane.xlu1 %2376 }
 0x75c   : > { %v5227_v1 = vmul.f32 %v3977_v56, %v5554_v37  ;;  %v2371_v31 = vpop.xlane.xlu0 %2370 }
 0x75e   : > { %v1165_v15 = vpack.c.bf16 %v5227_v1, %v5203_v18  ;;  %3651 = vmatpush3.bf16.msra.mxu1 %v3768_v20 }
 0x75f   : > { %v3979_v24 = vpop.eup %3978  ;;  %3652 = vmatprep.subr.bf16.mxu1 %v3769_v46 }
 0x760   : > { %v5232_v54 = vmul.f32 %v3979_v24, %v5555_v11  ;;  %v2383_v36 = vpop.xlane.xlu0 %2382 }
 0x762   : > { %3653 = vmatpush3.bf16.msra.mxu1 %v3769_v46 }
 0x763   : > { %v5260_v39 = vpop.xlane.xlu1 %2388 }
 0x764   : > { %v2379_v8 = vpop.xlane.xlu0 %2378 }
 0x789   : > { %v5262_v6 = vpop.xlane.xlu1 %2384 }
 0x78d   : > { %v5264_v29 = vpop.xlane.xlu1 %2396  ;;  %v5266_v34 = vpop.xlane.xlu0 %2390 }
 0x791   : > { %v5268_v22 = vpop.xlane.xlu0 %2386  ;;  %v5270_v10 = vpop.xlane.xlu1 %2392 }
 0x795   : > { %v5272_v43 = vpop.xlane.xlu0 %2398  ;;  %v1015_v60 = vpop.xlane.xlu1 %1014 }
 0x799   : > { %v5274_v5 = vpop.xlane.xlu0 %2394  ;;  %v1019_v53 = vpop.xlane.xlu1 %1018 }
 0x79d   : > { %v1013_v62 = vpop.xlane.xlu0 %1012  ;;  %v1023_v17 = vpop.xlane.xlu1 %1022 }
 0x79e   : > { %3980 = vrcp.f32 %v1013_v62 }
 0x79f   : > { %3982 = vrcp.f32 %v1015_v60 }
 0x7a0   : > { %3984 = vrcp.f32 %v2373_v3 }
 0x7a1   : > { %v1017_v27 = vpop.xlane.xlu0 %1016 }
 0x7a2   : > { %3986 = vrcp.f32 %v1017_v27 }
 0x7a3   : > { %3988 = vrcp.f32 %v2369_v28  ;;  %v5557_v28 = vld [vmem:[#allocation9_spill] sm:$0xff] }
 0x7a4   : > { %3990 = vrcp.f32 %v1019_v53 }
 0x7a5   : > { %3992 = vrcp.f32 %v2375_v63  ;;  %v1021_v56 = vpop.xlane.xlu0 %1020  ;;  %v5558_v63 = vld [vmem:[#allocation14_spill] sm:$0xff] }
 0x7a6   : > { %3994 = vrcp.f32 %v1021_v56 }
 0x7a7   : > { %3996 = vrcp.f32 %v2371_v31 }
 0x7a8   : > { %3998 = vrcp.f32 %v1023_v17  ;;  %v3981_v37 = vpop.eup %3980 }
 0x7a9   : > { %v1025_v24 = vpop.xlane.xlu0 %1024  ;;  %v3983_v11 = vpop.eup %3982  ;;  %v5277_v51 = vmul.f32 %v3981_v37, %v5556_v16  ;;  %v5560_v16 = vld [vmem:[#allocation17_spill] sm:$0xff] }
 0x7aa   : > { %4000 = vrcp.f32 %v1025_v24  ;;  %v3985_v23 = vpop.eup %3984  ;;  %v5282_v57 = vmul.f32 %v3983_v11, %v5557_v28  ;;  %v5559_v24 = vld [vmem:[#allocation15_spill] sm:$0xff] }
 0x7ab   : > { %4002 = vrcp.f32 %v2381_v49 }
 0x7ac   : > { %v3987_v30 = vpop.eup %3986  ;;  %4004 = vrcp.f32 %v2377_v2 }
 0x7ad   : > { %v3989_v38 = vpop.eup %3988  ;;  %v5285_v20 = vmul.f32 %v3987_v30, %v5558_v63  ;;  %4006 = vrcp.f32 %v2383_v36 }
 0x7ae   : > { %v3991_v31 = vpop.eup %3990  ;;  %v3624_v46 = vpop.f32.mrb[80].mxu1  ;;  %4008 = vrcp.f32 %v2379_v8 }
 0x7af   : > { %v3993_v60 = vpop.eup %3992  ;;  %v2466_v62 = vpop.f32.mrb[81].mxu1  ;;  %v2547_v56 = vmul.f32 %v3985_v23, %v3624_v46  ;;  %v5290_v11 = vmul.f32 %v3991_v31, %v5559_v24  ;;  %v5561_v23 = vld [vmem:[#allocation12_spill] sm:$0xff]  ;;  %4010 = vrcp.f32 %v5260_v39 }
 0x7b0   : > { %v3995_v53 = vpop.eup %3994  ;;  %v3625_v27 = vpop.f32.mrb[82].mxu1  ;;  %v2545_v28 = vmul.f32 %v3989_v38, %v2466_v62  ;;  %4012 = vrcp.f32 %v5262_v6 }
 0x7b1   : > { %v3997_v17 = vpop.eup %3996  ;;  %v2548_v2 = vmul.f32 %v3993_v60, %v3625_v27  ;;  %v2469_v37 = vpop.f32.mrb[83].mxu1  ;;  %v5293_v30 = vmul.f32 %v3995_v53, %v5560_v16  ;;  %v5562_v60 = vld [vmem:[#allocation16_spill] sm:$0xff]  ;;  %4014 = vrcp.f32 %v5266_v34 }
 0x7b2   : > { %v3999_v36 = vpop.eup %3998  ;;  %v2546_v63 = vmul.f32 %v3997_v17, %v2469_v37  ;;  %4016 = vrcp.f32 %v5268_v22 }
 0x7b3   : > { %v2562_v8 = vpack.c.bf16 %v2548_v2, %v2547_v56  ;;  %v1169_v3 = vpack.c.bf16 %v5293_v30, %v5290_v11  ;;  %v5299_v46 = vmul.f32 %v3999_v36, %v5561_v23  ;;  %4018 = vrcp.f32 %v5264_v29 }
 0x7b4   : > { %v4001_v49 = vpop.eup %4000  ;;  %v2561_v14 = vpack.c.bf16 %v2546_v63, %v2545_v28  ;;  %4020 = vrcp.f32 %v5270_v10 }
 0x7b5   : > { %2627 = vrot.lane.b32.xlu1 %v2562_v8, %s4035_s29  ;;  %v5302_v31 = vmul.f32 %v4001_v49, %v5562_v60  ;;  %v4003_v27 = vpop.eup %4002  ;;  %4022 = vrcp.f32 %v5272_v43 }
 0x7b6   : > { %v3628_v53 = vpop.f32.mrb[84].mxu1  ;;  %2625 = vrot.lane.b32.xlu0 %v2561_v14, %s4035_s29  ;;  %v4005_v38 = vpop.eup %4004  ;;  %4024 = vrcp.f32 %v5274_v5 }
 0x7b7   : > { %v2482_v62 = vpop.f32.mrb[85].mxu1  ;;  %v1170_v17 = vpack.c.bf16 %v5302_v31, %v5299_v46  ;;  %v4007_v56 = vpop.eup %4006  ;;  %v2551_v24 = vmul.f32 %v4003_v27, %v3628_v53 }
 0x7b8   : > { %v3629_v2 = vpop.f32.mrb[86].mxu1  ;;  %v4009_v37 = vpop.eup %4008  ;;  %v2549_v49 = vmul.f32 %v4005_v38, %v2482_v62 }
 0x7b9   : > { %v2552_v16 = vmul.f32 %v4007_v56, %v3629_v2  ;;  %v2485_v28 = vpop.f32.mrb[87].mxu1  ;;  %2611 = vrot.lane.b32.xlu1 %v2108_v0, %s4036_s12  ;;  %v4011_v59 = vpop.eup %4010 }
 0x7ba   : > { %v2550_v36 = vmul.f32 %v4009_v37, %v2485_v28  ;;  %2609 = vrot.lane.b32.xlu0 %v2107_v40, %s4036_s12  ;;  %v4013_v40 = vpop.eup %4012  ;;  %v2578_v2 = vpop.permute.xlu1 %2577 }
 0x7bb   : > { %v2564_v14 = vpack.c.bf16 %v2552_v16, %v2551_v24  ;;  %v4015_v9 = vpop.eup %4014  ;;  %v2580_v16 = vpop.permute.xlu0 %2579  ;;  %v2643_v48 = vsel %vm768_vm0, %v1163_v12, %v2578_v2  ;;  %v5563_v12 = vpack.c.bf16 %v5232_v54, %v5211_v50 }
 0x7bc   : > { %v2563_v63 = vpack.c.bf16 %v2550_v36, %v2549_v49  ;;  %v4017_v25 = vpop.eup %4016  ;;  %v2646_v44 = vsel %vm768_vm0, %v1164_v47, %v2580_v16 }
 0x7bd   : > { %2631 = vrot.lane.b32.xlu1 %v2564_v14, %s4035_s29  ;;  %v4019_v29 = vpop.eup %4018 }
 0x7be   : > { %2629 = vrot.lane.b32.xlu0 %v2563_v63, %s4035_s29  ;;  %v4021_v22 = vpop.eup %4020  ;;  %v2602_v37 = vpop.permute.xlu1 %2601 }
 0x7bf   : > { %v4023_v43 = vpop.eup %4022  ;;  %v2582_v61 = vpop.permute.xlu0 %2581  ;;  %v2667_v14 = vsel %vm2665_vm1, %v2643_v48, %v2602_v37 }
 0x7c0   : > { %v4025_v8 = vpop.eup %4024  ;;  %v2649_v33 = vsel %vm768_vm0, %v1165_v15, %v2582_v61  ;;  %v5564_v15 = vpack.c.bf16 %v5277_v51, %v5219_v58 }
 0x7c1   : > { %2591 = vrot.lane.b32.xlu1 %v1652_v26, %s4037_s6 }
 0x7c2   : > { %2589 = vrot.lane.b32.xlu0 %v1651_v45, %s4037_s6  ;;  %v2604_v24 = vpop.permute.xlu1 %2603 }
 0x7c6   : > { %v2584_v28 = vpop.permute.xlu1 %2583 }
 0x7c7   : > { %v2652_v47 = vsel %vm768_vm0, %v5563_v12, %v2584_v28 }
 0x7ca   : > { %v2608_v42 = vpop.permute.xlu1 %2607 }
 0x7ce   : > { %v2588_v49 = vpop.permute.xlu1 %2587 }
 0x7d5   : > { %v3632_v41 = vpop.f32.mrb[88].mxu1 }
 0x7d6   : > { %v2498_v4 = vpop.f32.mrb[89].mxu1  ;;  %v2555_v52 = vmul.f32 %v4011_v59, %v3632_v41  ;;  %v2669_v59 = vsel %vm2665_vm1, %v2646_v44, %v2604_v24 }
 0x7d7   : > { %v3633_v0 = vpop.f32.mrb[90].mxu1  ;;  %v2553_v7 = vmul.f32 %v4013_v40, %v2498_v4 }
 0x7d8   : > { %v2556_v45 = vmul.f32 %v4015_v9, %v3633_v0  ;;  %v2501_v35 = vpop.f32.mrb[91].mxu1  ;;  %v2673_v0 = vsel %vm2665_vm1, %v2652_v47, %v2608_v42 }
 0x7d9   : > { %v2554_v26 = vmul.f32 %v4017_v25, %v2501_v35 }
 0x7da   : > { %v2566_v39 = vpack.c.bf16 %v2556_v45, %v2555_v52  ;;  %v5565_v45 = vpack.c.bf16 %v5285_v20, %v5282_v57 }
 0x7db   : > { %v2565_v6 = vpack.c.bf16 %v2554_v26, %v2553_v7 }
 0x7dc   : > { %2635 = vrot.lane.b32.xlu1 %v2566_v39, %s4035_s29  ;;  %v2658_v35 = vsel %vm768_vm0, %v5565_v45, %v2588_v49 }
 0x7dd   : > { %v3636_v34 = vpop.f32.mrb[92].mxu1  ;;  %2633 = vrot.lane.b32.xlu0 %v2565_v6, %s4035_s29 }
 0x7de   : > { %v2514_v10 = vpop.f32.mrb[93].mxu1  ;;  %v2559_v23 = vmul.f32 %v4019_v29, %v3636_v34 }
 0x7df   : > { %v3637_v5 = vpop.f32.mrb[94].mxu1  ;;  %v2557_v53 = vmul.f32 %v4021_v22, %v2514_v10 }
 0x7e0   : > { %v2560_v60 = vmul.f32 %v4023_v43, %v3637_v5  ;;  %v2517_v27 = vpop.f32.mrb[95].mxu1  ;;  %2615 = vrot.lane.b32.xlu1 %v2110_v55, %s4036_s12  ;;  %v2606_v55 = vpop.permute.xlu0 %2605 }
 0x7e1   : > { %v2558_v38 = vmul.f32 %v4025_v8, %v2517_v27  ;;  %2613 = vrot.lane.b32.xlu0 %v2109_v21, %s4036_s12  ;;  %v2671_v4 = vsel %vm2665_vm1, %v2649_v33, %v2606_v55 }
 0x7e2   : > { %v2568_v62 = vpack.c.bf16 %v2560_v60, %v2559_v23 }
 0x7e3   : > { %v2567_v56 = vpack.c.bf16 %v2558_v38, %v2557_v53 }
 0x7e4   : > { %2639 = vrot.lane.b32.xlu1 %v2568_v62, %s4035_s29  ;;  %v2586_v36 = vpop.permute.xlu0 %2585 }
 0x7e5   : > { %2637 = vrot.lane.b32.xlu0 %v2567_v56, %s4035_s29  ;;  %v2655_v50 = vsel %vm768_vm0, %v5564_v15, %v2586_v36 }
 0x827   : > { %v2628_v21 = vpop.permute.xlu1 %2627 }
 0x828   : > { %v2626_v63 = vpop.permute.xlu0 %2625  ;;  %v2687_v40 = vsel %vm2682_vm2, %v2669_v59, %v2628_v21 }
 0x829   : > { %v2684_v41 = vsel %vm2682_vm2, %v2667_v14, %v2626_v63 }
 0x82a   : > { %3654 = vmatprep.mubr.bf16.mxu1 %v2684_v41 }
 0x82b   : > { %v2612_v19 = vpop.permute.xlu1 %2611  ;;  %3655 = vmatmul.mubr.bf16.vlgmr.msra.gmra.mrb[96].mxu1 %v2687_v40 }
 0x82c   : > { %v2610_v32 = vpop.permute.xlu0 %2609  ;;  %v2677_v39 = vsel %vm2665_vm1, %v2658_v35, %v2612_v19 }
 0x82d   : > { %v2675_v7 = vsel %vm2665_vm1, %v2655_v50, %v2610_v32 }
 0x82f   : > { %v2632_v13 = vpop.permute.xlu1 %2631 }
 0x830   : > { %v2630_v9 = vpop.permute.xlu0 %2629  ;;  %v2693_v52 = vsel %vm2682_vm2, %v2673_v0, %v2632_v13 }
 0x831   : > { %v2690_v25 = vsel %vm2682_vm2, %v2671_v4, %v2630_v9 }
 0x832   : > { %3658 = vmatprep.mubr.bf16.mxu1 %v2690_v25 }
 0x833   : > { %3659 = vmatmul.mubr.bf16.gmra.mrb[100].mxu1 %v2693_v52  ;;  %v2592_v18 = vpop.permute.xlu1 %2591 }
 0x834   : > { %v2590_v1 = vpop.permute.xlu0 %2589  ;;  %v2664_v34 = vsel %vm768_vm0, %v1170_v17, %v2592_v18 }
 0x835   : > { %v2661_v57 = vsel %vm768_vm0, %v1169_v3, %v2590_v1 }
 0x84e   : > { %v2636_v54 = vpop.permute.xlu1 %2635 }
 0x84f   : > { %v2634_v26 = vpop.permute.xlu0 %2633  ;;  %v2699_v29 = vsel %vm2682_vm2, %v2677_v39, %v2636_v54 }
 0x850   : > { %v2696_v6 = vsel %vm2682_vm2, %v2675_v7, %v2634_v26 }
 0x851   : > { %3662 = vmatprep.mubr.bf16.mxu1 %v2696_v6 }
 0x852   : > { %v2616_v58 = vpop.permute.xlu1 %2615  ;;  %3663 = vmatmul.mubr.bf16.gmra.mrb[104].mxu1 %v2699_v29 }
 0x853   : > { %v2614_v51 = vpop.permute.xlu0 %2613  ;;  %v2681_v43 = vsel %vm2665_vm1, %v2664_v34, %v2616_v58 }
 0x854   : > { %v2679_v22 = vsel %vm2665_vm1, %v2661_v57, %v2614_v51 }
 0x856   : > { %v2640_v20 = vpop.permute.xlu1 %2639 }
 0x857   : > { %v2638_v10 = vpop.permute.xlu0 %2637  ;;  %v2705_v8 = vsel %vm2682_vm2, %v2681_v43, %v2640_v20 }
 0x858   : > { %v2702_v5 = vsel %vm2682_vm2, %v2679_v22, %v2638_v10 }
 0x859   : > { %3666 = vmatprep.mubr.bf16.mxu1 %v2702_v5 }
 0x85a   : > { %3667 = vmatmul.mubr.bf16.gmra.mrb[108].mxu1 %v2705_v8 }
 0x8fe   : > { %v3656_v11 = vpop.f32.mrb[96].mxu1 }
 0x8ff   : > { %v2805_v30 = vpop.f32.mrb[97].mxu1 }
 0x900   : > { %v3657_v3 = vpop.f32.mrb[98].mxu1 }
 0x901   : > { %v3151_v46 = vpack.c.bf16 %v3657_v3, %v3656_v11  ;;  %v2808_v31 = vpop.f32.mrb[99].mxu1 }
 0x902   : > { %v3146_v17 = vpack.c.bf16 %v2808_v31, %v2805_v30 }
 0x903   : > { %3183 = vst [vmem:[%s244_s27 + $0x8] sm:$0xff] %v3151_v46  }
 0x904   : > { %3147 = vst [vmem:[%s244_s27] sm:$0xff] %v3146_v17  }
 0x906   : > { %v3660_v23 = vpop.f32.mrb[100].mxu1 }
 0x907   : > { %v2821_v60 = vpop.f32.mrb[101].mxu1 }
 0x908   : > { %v3661_v27 = vpop.f32.mrb[102].mxu1 }
 0x909   : > { %v3161_v53 = vpack.c.bf16 %v3661_v27, %v3660_v23  ;;  %v2824_v38 = vpop.f32.mrb[103].mxu1 }
 0x90a   : > { %v3156_v62 = vpack.c.bf16 %v2824_v38, %v2821_v60 }
 0x90b   : > { %3185 = vst [vmem:[%s244_s27 + $0x18] sm:$0xff] %v3161_v53  }
 0x90c   : > { %3184 = vst [vmem:[%s244_s27 + $0x10] sm:$0xff] %v3156_v62  }
 0x925   : > { %v3664_v56 = vpop.f32.mrb[104].mxu1 }
 0x926   : > { %v2837_v2 = vpop.f32.mrb[105].mxu1 }
 0x927   : > { %v3665_v37 = vpop.f32.mrb[106].mxu1 }
 0x928   : > { %v3171_v24 = vpack.c.bf16 %v3665_v37, %v3664_v56  ;;  %v2840_v16 = vpop.f32.mrb[107].mxu1 }
 0x929   : > { %v3166_v28 = vpack.c.bf16 %v2840_v16, %v2837_v2 }
 0x92a   : > { %3187 = vst [vmem:[%s244_s27 + $0x28] sm:$0xff] %v3171_v24  }
 0x92b   : > { %3186 = vst [vmem:[%s244_s27 + $0x20] sm:$0xff] %v3166_v28  }
 0x92d   : > { %v3668_v61 = vpop.f32.mrb[108].mxu1 }
 0x92e   : > { %v2853_v42 = vpop.f32.mrb[109].mxu1 }
 0x92f   : > { %v3669_v55 = vpop.f32.mrb[110].mxu1 }
 0x930   : > { %v3181_v49 = vpack.c.bf16 %v3669_v55, %v3668_v61  ;;  %v2856_v36 = vpop.f32.mrb[111].mxu1 }
 0x931   : > { %v3176_v44 = vpack.c.bf16 %v2856_v36, %v2853_v42 }
 0x932   : > { %3189 = vst [vmem:[%s244_s27 + $0x38] sm:$0xff] %v3181_v49  }
 0x933   : > { %3188 = vst [vmem:[%s244_s27 + $0x30] sm:$0xff] %v3176_v44  }
 0x934 PF: > { %s15_s18 = sadd.s32 1, %s4032_s18  }
 0x935   : > { %p12_p4 = scmp.ge.s32.totalorder %s15_s18, 4  }
 0x937   :  { %14 = sbr.rel (!%p12_p4) target bundleno = 1 (0x1), region = 73 }

</bundles_post_ra>
